<compile_context>
chip_gen: v7x
topology: tpu7x:2x2x1
jax: 0.10.0
libtpu: 0.0.40
codegen_flags: <defaults>
</compile_context>

<pallas_src>
import jax
import jax.numpy as jnp
from jax.experimental import pallas as pl
from jax.experimental.pallas import tpu as pltpu

# ----------------------------- small config -----------------------------
B = 2               # batch
PATCH = 8           # patch_size
IN_CH = 3           # in channels
EMBED = 32          # embed_dim
HEADS = 4           # num_heads
HEAD_DIM = EMBED // HEADS
DEPTH = 2           # number of encoder layers
MAX_PTS = 8         # max_point_num (tokens before cls)
SEQ = MAX_PTS + 1   # +1 cls token
MLP_HIDDEN = int(EMBED * 4.0)
NUM_CLASSES = 10
LN_EPS = 1e-5
CPP = IN_CH * PATCH * PATCH  # flattened patch length (c, i, j)


# ----------------------------- fused Pallas kernel -----------------------------
def _vit_kernel(
    x_ref,                      # [1, SEQ, CPP]   (row 0 = zeros -> cls slot)
    pv_w_ref, pv_b_ref,         # [CPP, D], [1, D]
    cls_ref,                    # [1, D]
    ln1_g_ref, ln1_b_ref,       # [DEPTH, 1, D]
    qkv_w_ref, qkv_b_ref,       # [DEPTH, D, 3D], [DEPTH, 1, 3D]
    proj_w_ref, proj_b_ref,     # [DEPTH, D, D], [DEPTH, 1, D]
    ln2_g_ref, ln2_b_ref,       # [DEPTH, 1, D]
    w1_ref, b1_ref,             # [DEPTH, D, H], [DEPTH, 1, H]
    w2_ref, b2_ref,             # [DEPTH, H, D], [DEPTH, 1, D]
    lnf_g_ref, lnf_b_ref,       # [1, D]
    head_w_ref, head_b_ref,     # [D, NUM_CLASSES], [1, NUM_CLASSES]
    logits_ref,                 # [1, 1, NUM_CLASSES]
):
    f32 = jnp.float32

    def layernorm(v, g, b):
        mean = jnp.mean(v, axis=-1, keepdims=True)
        c = v - mean
        var = jnp.mean(c * c, axis=-1, keepdims=True)
        return c * jax.lax.rsqrt(var + LN_EPS) * g + b

    # patch_to_vector: Conv2d(3, D, kernel=P, stride=1) on a PxP patch == matmul.
    tok = jnp.dot(x_ref[0], pv_w_ref[...], preferred_element_type=f32) + pv_b_ref[...]
    # Row 0 corresponds to the zero "cls slot": overwrite it with the cls token.
    row = jax.lax.broadcasted_iota(jnp.int32, (SEQ, EMBED), 0)
    cls_b = jnp.broadcast_to(cls_ref[...], (SEQ, EMBED))
    x = jnp.where(row == 0, cls_b, tok)                       # [SEQ, D]
    # pos_drop / attn_drop / mlp dropout: identity in eval mode.

    scale = 1.0 / (HEAD_DIM ** 0.5)
    inv_sqrt2 = 0.7071067811865476

    for l in range(DEPTH):                                    # DEPTH=2, unrolled
        # ------------------ attention block ------------------
        h = layernorm(x, ln1_g_ref[l], ln1_b_ref[l])
        qkv = jnp.dot(h, qkv_w_ref[l], preferred_element_type=f32) + qkv_b_ref[l]
        proj_w = proj_w_ref[l]                                # [D, D]

        acc = jnp.zeros((SEQ, EMBED), f32)
        for hh in range(HEADS):                               # HEADS=4, unrolled
            lo = hh * HEAD_DIM
            hi = lo + HEAD_DIM
            q = qkv[:, lo:hi]                                 # [S, hd]
            k = qkv[:, EMBED + lo:EMBED + hi]                 # [S, hd]
            v = qkv[:, 2 * EMBED + lo:2 * EMBED + hi]         # [S, hd]
            # scores = q @ k^T (contract last dims, no explicit transpose op)
            s = jax.lax.dot_general(
                q, k, (((1,), (1,)), ((), ())), preferred_element_type=f32) * scale
            s = s - jnp.max(s, axis=-1, keepdims=True)
            p = jnp.exp(s)
            p = p * pl.reciprocal(jnp.sum(p, axis=-1, keepdims=True), approx=True)
            o = jnp.dot(p, v, preferred_element_type=f32)     # [S, hd]
            # concat over heads followed by out-projection == per-head block matmul
            acc = acc + jnp.dot(o, proj_w[lo:hi, :], preferred_element_type=f32)
        x = x + acc + proj_b_ref[l]

        # ------------------ MLP block ------------------
        h2 = layernorm(x, ln2_g_ref[l], ln2_b_ref[l])
        hid = jnp.dot(h2, w1_ref[l], preferred_element_type=f32) + b1_ref[l]
        # exact GELU (erf based), matching torch.nn.GELU() default
        hid = 0.5 * hid * (1.0 + jax.lax.erf(hid * inv_sqrt2))
        x = x + jnp.dot(hid, w2_ref[l], preferred_element_type=f32) + b2_ref[l]

    # final LayerNorm on the cls token + classification head
    cls_row = layernorm(x[0:1, :], lnf_g_ref[...], lnf_b_ref[...])     # [1, D]
    logits_ref[0] = (
        jnp.dot(cls_row, head_w_ref[...], preferred_element_type=f32)
        + head_b_ref[...]
    )


def _const_spec(arr):
    """Full-array VMEM block, same block for every grid step."""
    zeros = (0,) * arr.ndim
    return pl.BlockSpec(arr.shape, lambda b, _z=zeros: _z)


def _vit_pallas(params, patches_ext):
    """patches_ext: [B, SEQ, CPP] f32 (row 0 of each batch is zeros)."""
    bsz = patches_ext.shape[0]
    weights = [
        params["pv_w"], params["pv_b"], params["cls_token"],
        params["ln1_g"], params["ln1_b"],
        params["qkv_w"], params["qkv_b"],
        params["proj_w"], params["proj_b"],
        params["ln2_g"], params["ln2_b"],
        params["mlp_w1"], params["mlp_b1"],
        params["mlp_w2"], params["mlp_b2"],
        params["ln_f_g"], params["ln_f_b"],
        params["head_w"], params["head_b"],
    ]
    in_specs = [pl.BlockSpec((1, SEQ, CPP), lambda b: (b, 0, 0))]
    in_specs += [_const_spec(w) for w in weights]

    out = pl.pallas_call(
        _vit_kernel,
        out_shape=jax.ShapeDtypeStruct((bsz, 1, NUM_CLASSES), jnp.float32),
        grid=(bsz,),
        in_specs=in_specs,
        out_specs=pl.BlockSpec((1, 1, NUM_CLASSES), lambda b: (b, 0, 0)),
        compiler_params=pltpu.CompilerParams(
            dimension_semantics=("parallel",)),   # 2 TCs on v7x; no-op on v5e/v6e
    )(patches_ext, *weights)
    return out[:, 0, :]                           # [B, NUM_CLASSES]


# ----------------------------- parameters -----------------------------
def init_params(key):
    def rnd(k, shape, scale=0.02):
        return scale * jax.random.normal(k, shape, dtype=jnp.float32)

    keys = iter(jax.random.split(key, 64))
    p = {}
    # patch_to_vector: Conv2d(3, D, kernel=P, stride=1) on PxP input == linear,
    # weight flattened in (c, i, j) order.
    p["pv_w"] = rnd(next(keys), (CPP, EMBED))
    p["pv_b"] = rnd(next(keys), (1, EMBED))
    p["cls_token"] = jnp.zeros((1, EMBED), jnp.float32)      # torch.zeros init
    # RelativeAttentionBias: Linear(5, D)
    p["pos_w"] = rnd(next(keys), (5, EMBED))
    p["pos_b"] = rnd(next(keys), (EMBED,))
    # encoder layers, stacked over DEPTH
    p["ln1_g"] = 1.0 + rnd(next(keys), (DEPTH, 1, EMBED))
    p["ln1_b"] = rnd(next(keys), (DEPTH, 1, EMBED))
    p["qkv_w"] = rnd(next(keys), (DEPTH, EMBED, 3 * EMBED))
    p["qkv_b"] = rnd(next(keys), (DEPTH, 1, 3 * EMBED))
    p["proj_w"] = rnd(next(keys), (DEPTH, EMBED, EMBED))
    p["proj_b"] = rnd(next(keys), (DEPTH, 1, EMBED))
    p["ln2_g"] = 1.0 + rnd(next(keys), (DEPTH, 1, EMBED))
    p["ln2_b"] = rnd(next(keys), (DEPTH, 1, EMBED))
    p["mlp_w1"] = rnd(next(keys), (DEPTH, EMBED, MLP_HIDDEN))
    p["mlp_b1"] = rnd(next(keys), (DEPTH, 1, MLP_HIDDEN))
    p["mlp_w2"] = rnd(next(keys), (DEPTH, MLP_HIDDEN, EMBED))
    p["mlp_b2"] = rnd(next(keys), (DEPTH, 1, EMBED))
    # final norm + head
    p["ln_f_g"] = 1.0 + rnd(next(keys), (1, EMBED))
    p["ln_f_b"] = rnd(next(keys), (1, EMBED))
    p["head_w"] = rnd(next(keys), (EMBED, NUM_CLASSES))
    p["head_b"] = rnd(next(keys), (1, NUM_CLASSES))
    return p


# ----------------------------- forward pass -----------------------------
@jax.jit
def vit_forward(params, patches, positions):
    """patches: [B, MAX_PTS, PATCH, PATCH, 3] f32 (already padded to max_point_num)
       positions: [B, MAX_PTS, 5] f32 (center xy, eigvals, angle)."""
    bsz, n, ph, pw, c = patches.shape

    # x.permute(0,1,4,2,3) -> [B,N,C,P,P]; conv(kernel=P, stride=1) == matmul on
    # the (c,i,j)-flattened patch.  Prepend a zero row per batch for the cls slot
    # (overwritten inside the kernel with the cls token).
    pf = jnp.transpose(patches, (0, 1, 4, 2, 3)).reshape(bsz, n, c * ph * pw)
    pf = jnp.pad(pf, ((0, 0), (1, 0), (0, 0)))               # [B, SEQ, CPP]

    logits = _vit_pallas(params, pf)                          # single fused kernel

    # RelativeAttentionBias: computed by the reference forward but never added to
    # the attention scores (dead compute) -> kept as a tiny fused plain-XLA expr.
    emb = jnp.pad(positions, ((0, 0), (1, 0), (0, 0)))        # F.pad(..., (0,0,1,0))
    rel = emb[:, :, None, :] - emb[:, None, :, :]             # [B, S, S, 5]
    pos_bias = jnp.einsum("bqks,sd->bqkd", rel, params["pos_w"]) + params["pos_b"]
    return logits, pos_bias


# ----------------------------- main -----------------------------
if __name__ == "__main__":
    key = jax.random.PRNGKey(0)
    k_params, k_patch, k_pos = jax.random.split(key, 3)

    params = init_params(k_params)
    # synthetic resized keypoint patches and 5-D positions (stand-ins for kornia outputs)
    patches = jax.random.normal(k_patch, (B, MAX_PTS, PATCH, PATCH, IN_CH), jnp.float32)
    positions = jax.random.normal(k_pos, (B, MAX_PTS, 5), jnp.float32)

    logits, pos_bias = vit_forward(params, patches, positions)
    logits = jax.block_until_ready(logits)
    pos_bias = jax.block_until_ready(pos_bias)

    assert logits.shape == (B, NUM_CLASSES)
    assert pos_bias.shape == (B, SEQ, SEQ, EMBED)
    assert bool(jnp.all(jnp.isfinite(logits)))
    print("KERNEL_OK")
</pallas_src>

<mosaic_0001>
module attributes {stable_mosaic.version = 11 : i64} {
  func.func @_vit_kernel(%arg0: i32, %arg1: memref<1x9x192xf32, #tpu.memory_space<vmem>>, %arg2: memref<192x32xf32, #tpu.memory_space<vmem>>, %arg3: memref<1x32xf32, #tpu.memory_space<vmem>>, %arg4: memref<1x32xf32, #tpu.memory_space<vmem>>, %arg5: memref<2x1x32xf32, #tpu.memory_space<vmem>>, %arg6: memref<2x1x32xf32, #tpu.memory_space<vmem>>, %arg7: memref<2x32x96xf32, #tpu.memory_space<vmem>>, %arg8: memref<2x1x96xf32, #tpu.memory_space<vmem>>, %arg9: memref<2x32x32xf32, #tpu.memory_space<vmem>>, %arg10: memref<2x1x32xf32, #tpu.memory_space<vmem>>, %arg11: memref<2x1x32xf32, #tpu.memory_space<vmem>>, %arg12: memref<2x1x32xf32, #tpu.memory_space<vmem>>, %arg13: memref<2x32x128xf32, #tpu.memory_space<vmem>>, %arg14: memref<2x1x128xf32, #tpu.memory_space<vmem>>, %arg15: memref<2x128x32xf32, #tpu.memory_space<vmem>>, %arg16: memref<2x1x32xf32, #tpu.memory_space<vmem>>, %arg17: memref<1x32xf32, #tpu.memory_space<vmem>>, %arg18: memref<1x32xf32, #tpu.memory_space<vmem>>, %arg19: memref<32x10xf32, #tpu.memory_space<vmem>>, %arg20: memref<1x10xf32, #tpu.memory_space<vmem>>, %arg21: memref<1x1x10xf32, #tpu.memory_space<vmem>>) attributes {dimension_semantics = [#tpu.dimension_semantics<parallel>], iteration_bounds = array<i64: 2>, scalar_prefetch = 0 : i64, scratch_operands = 0 : i64, tpu.core_type = #tpu.core_type<tc>, window_params = [{transform_indices = @transform_0, window_bounds = array<i64: 1, 9, 192>}, {pipeline_mode = #tpu.pipeline_mode<synchronous>, transform_indices = @transform_1, window_bounds = array<i64: 192, 32>}, {pipeline_mode = #tpu.pipeline_mode<synchronous>, transform_indices = @transform_2, window_bounds = array<i64: 1, 32>}, {pipeline_mode = #tpu.pipeline_mode<synchronous>, transform_indices = @transform_3, window_bounds = array<i64: 1, 32>}, {pipeline_mode = #tpu.pipeline_mode<synchronous>, transform_indices = @transform_4, window_bounds = array<i64: 2, 1, 32>}, {pipeline_mode = #tpu.pipeline_mode<synchronous>, transform_indices = @transform_5, window_bounds = array<i64: 2, 1, 32>}, {pipeline_mode = #tpu.pipeline_mode<synchronous>, transform_indices = @transform_6, window_bounds = array<i64: 2, 32, 96>}, {pipeline_mode = #tpu.pipeline_mode<synchronous>, transform_indices = @transform_7, window_bounds = array<i64: 2, 1, 96>}, {pipeline_mode = #tpu.pipeline_mode<synchronous>, transform_indices = @transform_8, window_bounds = array<i64: 2, 32, 32>}, {pipeline_mode = #tpu.pipeline_mode<synchronous>, transform_indices = @transform_9, window_bounds = array<i64: 2, 1, 32>}, {pipeline_mode = #tpu.pipeline_mode<synchronous>, transform_indices = @transform_10, window_bounds = array<i64: 2, 1, 32>}, {pipeline_mode = #tpu.pipeline_mode<synchronous>, transform_indices = @transform_11, window_bounds = array<i64: 2, 1, 32>}, {pipeline_mode = #tpu.pipeline_mode<synchronous>, transform_indices = @transform_12, window_bounds = array<i64: 2, 32, 128>}, {pipeline_mode = #tpu.pipeline_mode<synchronous>, transform_indices = @transform_13, window_bounds = array<i64: 2, 1, 128>}, {pipeline_mode = #tpu.pipeline_mode<synchronous>, transform_indices = @transform_14, window_bounds = array<i64: 2, 128, 32>}, {pipeline_mode = #tpu.pipeline_mode<synchronous>, transform_indices = @transform_15, window_bounds = array<i64: 2, 1, 32>}, {pipeline_mode = #tpu.pipeline_mode<synchronous>, transform_indices = @transform_16, window_bounds = array<i64: 1, 32>}, {pipeline_mode = #tpu.pipeline_mode<synchronous>, transform_indices = @transform_17, window_bounds = array<i64: 1, 32>}, {pipeline_mode = #tpu.pipeline_mode<synchronous>, transform_indices = @transform_18, window_bounds = array<i64: 32, 10>}, {pipeline_mode = #tpu.pipeline_mode<synchronous>, transform_indices = @transform_19, window_bounds = array<i64: 1, 10>}, {transform_indices = @transform_20, window_bounds = array<i64: 1, 1, 10>}]} {
    %c0 = arith.constant 0 : index
    %c0_0 = arith.constant 0 : index
    %c0_1 = arith.constant 0 : index
    %0 = vector.load %arg1[%c0, %c0_0, %c0_1] : memref<1x9x192xf32, #tpu.memory_space<vmem>>, vector<1x9x192xf32>
    %1 = vector.shape_cast %0 : vector<1x9x192xf32> to vector<9x192xf32>
    %c0_2 = arith.constant 0 : index
    %c0_3 = arith.constant 0 : index
    %2 = vector.load %arg2[%c0_2, %c0_3] : memref<192x32xf32, #tpu.memory_space<vmem>>, vector<192x32xf32>
    %cst = arith.constant dense<0.000000e+00> : vector<9x32xf32>
    %3 = tpu.matmul %1, %2, %cst {dimension_numbers = #tpu.dot_dimension_numbers<[1], [0], [0], [1], [0, 0, 1, 1], [], []>} : vector<9x192xf32>, vector<192x32xf32>, vector<9x32xf32> -> vector<9x32xf32>
    %c0_4 = arith.constant 0 : index
    %c0_5 = arith.constant 0 : index
    %4 = vector.load %arg3[%c0_4, %c0_5] : memref<1x32xf32, #tpu.memory_space<vmem>>, vector<1x32xf32>
    %5 = vector.broadcast %4 : vector<1x32xf32> to vector<9x32xf32>
    %6 = arith.addf %3, %5 : vector<9x32xf32>
    %7 = tpu.iota {dimensions = array<i32: 0>} : vector<9x32xi32>
    %c0_6 = arith.constant 0 : index
    %c0_7 = arith.constant 0 : index
    %8 = vector.load %arg4[%c0_6, %c0_7] : memref<1x32xf32, #tpu.memory_space<vmem>>, vector<1x32xf32>
    %9 = vector.shape_cast %8 : vector<1x32xf32> to vector<1x32xf32>
    %10 = vector.broadcast %9 : vector<1x32xf32> to vector<9x32xf32>
    %c0_i32 = arith.constant 0 : i32
    %11 = vector.broadcast %c0_i32 : i32 to vector<9x32xi32>
    %12 = arith.cmpi eq, %7, %11 : vector<9x32xi32>
    %13 = arith.select %12, %10, %6 : vector<9x32xi1>, vector<9x32xf32>
    %c0_8 = arith.constant 0 : index
    %c0_9 = arith.constant 0 : index
    %c0_10 = arith.constant 0 : index
    %14 = vector.load %arg5[%c0_8, %c0_9, %c0_10] : memref<2x1x32xf32, #tpu.memory_space<vmem>>, vector<1x1x32xf32>
    %15 = vector.shape_cast %14 : vector<1x1x32xf32> to vector<1x32xf32>
    %c0_11 = arith.constant 0 : index
    %c0_12 = arith.constant 0 : index
    %c0_13 = arith.constant 0 : index
    %16 = vector.load %arg6[%c0_11, %c0_12, %c0_13] : memref<2x1x32xf32, #tpu.memory_space<vmem>>, vector<1x1x32xf32>
    %17 = vector.shape_cast %16 : vector<1x1x32xf32> to vector<1x32xf32>
    %cst_14 = arith.constant dense<0.000000e+00> : vector<9xf32>
    %18 = vector.multi_reduction <add>, %13, %cst_14 [1] : vector<9x32xf32> to vector<9xf32>
    %19 = vector.shape_cast %18 : vector<9xf32> to vector<9x1xf32>
    %cst_15 = arith.constant 3.200000e+01 : f32
    %20 = vector.broadcast %cst_15 : f32 to vector<9x1xf32>
    %21 = arith.divf %19, %20 : vector<9x1xf32>
    %22 = vector.broadcast %21 : vector<9x1xf32> to vector<9x32xf32>
    %23 = arith.subf %13, %22 : vector<9x32xf32>
    %24 = arith.mulf %23, %23 : vector<9x32xf32>
    %cst_16 = arith.constant dense<0.000000e+00> : vector<9xf32>
    %25 = vector.multi_reduction <add>, %24, %cst_16 [1] : vector<9x32xf32> to vector<9xf32>
    %26 = vector.shape_cast %25 : vector<9xf32> to vector<9x1xf32>
    %cst_17 = arith.constant 3.200000e+01 : f32
    %27 = vector.broadcast %cst_17 : f32 to vector<9x1xf32>
    %28 = arith.divf %26, %27 : vector<9x1xf32>
    %cst_18 = arith.constant 9.99999974E-6 : f32
    %29 = vector.broadcast %cst_18 : f32 to vector<9x1xf32>
    %30 = arith.addf %28, %29 : vector<9x1xf32>
    %31 = math.rsqrt %30 : vector<9x1xf32>
    %32 = vector.broadcast %31 : vector<9x1xf32> to vector<9x32xf32>
    %33 = arith.mulf %23, %32 : vector<9x32xf32>
    %34 = vector.broadcast %15 : vector<1x32xf32> to vector<9x32xf32>
    %35 = arith.mulf %33, %34 : vector<9x32xf32>
    %36 = vector.broadcast %17 : vector<1x32xf32> to vector<9x32xf32>
    %37 = arith.addf %35, %36 : vector<9x32xf32>
    %c0_19 = arith.constant 0 : index
    %c0_20 = arith.constant 0 : index
    %c0_21 = arith.constant 0 : index
    %38 = vector.load %arg7[%c0_19, %c0_20, %c0_21] : memref<2x32x96xf32, #tpu.memory_space<vmem>>, vector<1x32x96xf32>
    %39 = vector.shape_cast %38 : vector<1x32x96xf32> to vector<32x96xf32>
    %cst_22 = arith.constant dense<0.000000e+00> : vector<9x96xf32>
    %40 = tpu.matmul %37, %39, %cst_22 {dimension_numbers = #tpu.dot_dimension_numbers<[1], [0], [0], [1], [0, 0, 1, 1], [], []>} : vector<9x32xf32>, vector<32x96xf32>, vector<9x96xf32> -> vector<9x96xf32>
    %c0_23 = arith.constant 0 : index
    %c0_24 = arith.constant 0 : index
    %c0_25 = arith.constant 0 : index
    %41 = vector.load %arg8[%c0_23, %c0_24, %c0_25] : memref<2x1x96xf32, #tpu.memory_space<vmem>>, vector<1x1x96xf32>
    %42 = vector.shape_cast %41 : vector<1x1x96xf32> to vector<1x96xf32>
    %43 = vector.broadcast %42 : vector<1x96xf32> to vector<9x96xf32>
    %44 = arith.addf %40, %43 : vector<9x96xf32>
    %c0_26 = arith.constant 0 : index
    %c0_27 = arith.constant 0 : index
    %c0_28 = arith.constant 0 : index
    %45 = vector.load %arg9[%c0_26, %c0_27, %c0_28] : memref<2x32x32xf32, #tpu.memory_space<vmem>>, vector<1x32x32xf32>
    %46 = vector.shape_cast %45 : vector<1x32x32xf32> to vector<32x32xf32>
    %cst_29 = arith.constant 0.000000e+00 : f32
    %47 = vector.broadcast %cst_29 : f32 to vector<9x32xf32>
    %48 = vector.extract_strided_slice %44 {offsets = [0, 0], sizes = [9, 8], strides = [1, 1]} : vector<9x96xf32> to vector<9x8xf32>
    %49 = vector.extract_strided_slice %44 {offsets = [0, 32], sizes = [9, 8], strides = [1, 1]} : vector<9x96xf32> to vector<9x8xf32>
    %50 = vector.extract_strided_slice %44 {offsets = [0, 64], sizes = [9, 8], strides = [1, 1]} : vector<9x96xf32> to vector<9x8xf32>
    %cst_30 = arith.constant dense<0.000000e+00> : vector<9x9xf32>
    %51 = tpu.matmul %48, %49, %cst_30 {dimension_numbers = #tpu.dot_dimension_numbers<[1], [1], [0], [0], [0, 0, 1, 0], [], []>} : vector<9x8xf32>, vector<9x8xf32>, vector<9x9xf32> -> vector<9x9xf32>
    %cst_31 = arith.constant 0.353553385 : f32
    %52 = vector.broadcast %cst_31 : f32 to vector<9x9xf32>
    %53 = arith.mulf %51, %52 : vector<9x9xf32>
    %cst_32 = arith.constant dense<0xFF800000> : vector<9xf32>
    %54 = vector.multi_reduction <maximumf>, %53, %cst_32 [1] : vector<9x9xf32> to vector<9xf32>
    %55 = vector.shape_cast %54 : vector<9xf32> to vector<9x1xf32>
    %56 = vector.broadcast %55 : vector<9x1xf32> to vector<9x9xf32>
    %57 = arith.subf %53, %56 : vector<9x9xf32>
    %58 = math.exp %57 : vector<9x9xf32>
    %cst_33 = arith.constant dense<0.000000e+00> : vector<9xf32>
    %59 = vector.multi_reduction <add>, %58, %cst_33 [1] : vector<9x9xf32> to vector<9xf32>
    %60 = vector.shape_cast %59 : vector<9xf32> to vector<9x1xf32>
    %61 = tpu.reciprocal %60 {approx = true} : vector<9x1xf32> -> vector<9x1xf32>
    %62 = vector.broadcast %61 : vector<9x1xf32> to vector<9x9xf32>
    %63 = arith.mulf %58, %62 : vector<9x9xf32>
    %cst_34 = arith.constant dense<0.000000e+00> : vector<9x8xf32>
    %64 = tpu.matmul %63, %50, %cst_34 {dimension_numbers = #tpu.dot_dimension_numbers<[1], [0], [0], [1], [0, 0, 1, 1], [], []>} : vector<9x9xf32>, vector<9x8xf32>, vector<9x8xf32> -> vector<9x8xf32>
    %65 = vector.extract_strided_slice %46 {offsets = [0, 0], sizes = [8, 32], strides = [1, 1]} : vector<32x32xf32> to vector<8x32xf32>
    %cst_35 = arith.constant dense<0.000000e+00> : vector<9x32xf32>
    %66 = tpu.matmul %64, %65, %cst_35 {dimension_numbers = #tpu.dot_dimension_numbers<[1], [0], [0], [1], [0, 0, 1, 1], [], []>} : vector<9x8xf32>, vector<8x32xf32>, vector<9x32xf32> -> vector<9x32xf32>
    %67 = arith.addf %47, %66 : vector<9x32xf32>
    %68 = vector.extract_strided_slice %44 {offsets = [0, 8], sizes = [9, 8], strides = [1, 1]} : vector<9x96xf32> to vector<9x8xf32>
    %69 = vector.extract_strided_slice %44 {offsets = [0, 40], sizes = [9, 8], strides = [1, 1]} : vector<9x96xf32> to vector<9x8xf32>
    %70 = vector.extract_strided_slice %44 {offsets = [0, 72], sizes = [9, 8], strides = [1, 1]} : vector<9x96xf32> to vector<9x8xf32>
    %cst_36 = arith.constant dense<0.000000e+00> : vector<9x9xf32>
    %71 = tpu.matmul %68, %69, %cst_36 {dimension_numbers = #tpu.dot_dimension_numbers<[1], [1], [0], [0], [0, 0, 1, 0], [], []>} : vector<9x8xf32>, vector<9x8xf32>, vector<9x9xf32> -> vector<9x9xf32>
    %cst_37 = arith.constant 0.353553385 : f32
    %72 = vector.broadcast %cst_37 : f32 to vector<9x9xf32>
    %73 = arith.mulf %71, %72 : vector<9x9xf32>
    %cst_38 = arith.constant dense<0xFF800000> : vector<9xf32>
    %74 = vector.multi_reduction <maximumf>, %73, %cst_38 [1] : vector<9x9xf32> to vector<9xf32>
    %75 = vector.shape_cast %74 : vector<9xf32> to vector<9x1xf32>
    %76 = vector.broadcast %75 : vector<9x1xf32> to vector<9x9xf32>
    %77 = arith.subf %73, %76 : vector<9x9xf32>
    %78 = math.exp %77 : vector<9x9xf32>
    %cst_39 = arith.constant dense<0.000000e+00> : vector<9xf32>
    %79 = vector.multi_reduction <add>, %78, %cst_39 [1] : vector<9x9xf32> to vector<9xf32>
    %80 = vector.shape_cast %79 : vector<9xf32> to vector<9x1xf32>
    %81 = tpu.reciprocal %80 {approx = true} : vector<9x1xf32> -> vector<9x1xf32>
    %82 = vector.broadcast %81 : vector<9x1xf32> to vector<9x9xf32>
    %83 = arith.mulf %78, %82 : vector<9x9xf32>
    %cst_40 = arith.constant dense<0.000000e+00> : vector<9x8xf32>
    %84 = tpu.matmul %83, %70, %cst_40 {dimension_numbers = #tpu.dot_dimension_numbers<[1], [0], [0], [1], [0, 0, 1, 1], [], []>} : vector<9x9xf32>, vector<9x8xf32>, vector<9x8xf32> -> vector<9x8xf32>
    %85 = vector.extract_strided_slice %46 {offsets = [8, 0], sizes = [8, 32], strides = [1, 1]} : vector<32x32xf32> to vector<8x32xf32>
    %cst_41 = arith.constant dense<0.000000e+00> : vector<9x32xf32>
    %86 = tpu.matmul %84, %85, %cst_41 {dimension_numbers = #tpu.dot_dimension_numbers<[1], [0], [0], [1], [0, 0, 1, 1], [], []>} : vector<9x8xf32>, vector<8x32xf32>, vector<9x32xf32> -> vector<9x32xf32>
    %87 = arith.addf %67, %86 : vector<9x32xf32>
    %88 = vector.extract_strided_slice %44 {offsets = [0, 16], sizes = [9, 8], strides = [1, 1]} : vector<9x96xf32> to vector<9x8xf32>
    %89 = vector.extract_strided_slice %44 {offsets = [0, 48], sizes = [9, 8], strides = [1, 1]} : vector<9x96xf32> to vector<9x8xf32>
    %90 = vector.extract_strided_slice %44 {offsets = [0, 80], sizes = [9, 8], strides = [1, 1]} : vector<9x96xf32> to vector<9x8xf32>
    %cst_42 = arith.constant dense<0.000000e+00> : vector<9x9xf32>
    %91 = tpu.matmul %88, %89, %cst_42 {dimension_numbers = #tpu.dot_dimension_numbers<[1], [1], [0], [0], [0, 0, 1, 0], [], []>} : vector<9x8xf32>, vector<9x8xf32>, vector<9x9xf32> -> vector<9x9xf32>
    %cst_43 = arith.constant 0.353553385 : f32
    %92 = vector.broadcast %cst_43 : f32 to vector<9x9xf32>
    %93 = arith.mulf %91, %92 : vector<9x9xf32>
    %cst_44 = arith.constant dense<0xFF800000> : vector<9xf32>
    %94 = vector.multi_reduction <maximumf>, %93, %cst_44 [1] : vector<9x9xf32> to vector<9xf32>
    %95 = vector.shape_cast %94 : vector<9xf32> to vector<9x1xf32>
    %96 = vector.broadcast %95 : vector<9x1xf32> to vector<9x9xf32>
    %97 = arith.subf %93, %96 : vector<9x9xf32>
    %98 = math.exp %97 : vector<9x9xf32>
    %cst_45 = arith.constant dense<0.000000e+00> : vector<9xf32>
    %99 = vector.multi_reduction <add>, %98, %cst_45 [1] : vector<9x9xf32> to vector<9xf32>
    %100 = vector.shape_cast %99 : vector<9xf32> to vector<9x1xf32>
    %101 = tpu.reciprocal %100 {approx = true} : vector<9x1xf32> -> vector<9x1xf32>
    %102 = vector.broadcast %101 : vector<9x1xf32> to vector<9x9xf32>
    %103 = arith.mulf %98, %102 : vector<9x9xf32>
    %cst_46 = arith.constant dense<0.000000e+00> : vector<9x8xf32>
    %104 = tpu.matmul %103, %90, %cst_46 {dimension_numbers = #tpu.dot_dimension_numbers<[1], [0], [0], [1], [0, 0, 1, 1], [], []>} : vector<9x9xf32>, vector<9x8xf32>, vector<9x8xf32> -> vector<9x8xf32>
    %105 = vector.extract_strided_slice %46 {offsets = [16, 0], sizes = [8, 32], strides = [1, 1]} : vector<32x32xf32> to vector<8x32xf32>
    %cst_47 = arith.constant dense<0.000000e+00> : vector<9x32xf32>
    %106 = tpu.matmul %104, %105, %cst_47 {dimension_numbers = #tpu.dot_dimension_numbers<[1], [0], [0], [1], [0, 0, 1, 1], [], []>} : vector<9x8xf32>, vector<8x32xf32>, vector<9x32xf32> -> vector<9x32xf32>
    %107 = arith.addf %87, %106 : vector<9x32xf32>
    %108 = vector.extract_strided_slice %44 {offsets = [0, 24], sizes = [9, 8], strides = [1, 1]} : vector<9x96xf32> to vector<9x8xf32>
    %109 = vector.extract_strided_slice %44 {offsets = [0, 56], sizes = [9, 8], strides = [1, 1]} : vector<9x96xf32> to vector<9x8xf32>
    %110 = vector.extract_strided_slice %44 {offsets = [0, 88], sizes = [9, 8], strides = [1, 1]} : vector<9x96xf32> to vector<9x8xf32>
    %cst_48 = arith.constant dense<0.000000e+00> : vector<9x9xf32>
    %111 = tpu.matmul %108, %109, %cst_48 {dimension_numbers = #tpu.dot_dimension_numbers<[1], [1], [0], [0], [0, 0, 1, 0], [], []>} : vector<9x8xf32>, vector<9x8xf32>, vector<9x9xf32> -> vector<9x9xf32>
    %cst_49 = arith.constant 0.353553385 : f32
    %112 = vector.broadcast %cst_49 : f32 to vector<9x9xf32>
    %113 = arith.mulf %111, %112 : vector<9x9xf32>
    %cst_50 = arith.constant dense<0xFF800000> : vector<9xf32>
    %114 = vector.multi_reduction <maximumf>, %113, %cst_50 [1] : vector<9x9xf32> to vector<9xf32>
    %115 = vector.shape_cast %114 : vector<9xf32> to vector<9x1xf32>
    %116 = vector.broadcast %115 : vector<9x1xf32> to vector<9x9xf32>
    %117 = arith.subf %113, %116 : vector<9x9xf32>
    %118 = math.exp %117 : vector<9x9xf32>
    %cst_51 = arith.constant dense<0.000000e+00> : vector<9xf32>
    %119 = vector.multi_reduction <add>, %118, %cst_51 [1] : vector<9x9xf32> to vector<9xf32>
    %120 = vector.shape_cast %119 : vector<9xf32> to vector<9x1xf32>
    %121 = tpu.reciprocal %120 {approx = true} : vector<9x1xf32> -> vector<9x1xf32>
    %122 = vector.broadcast %121 : vector<9x1xf32> to vector<9x9xf32>
    %123 = arith.mulf %118, %122 : vector<9x9xf32>
    %cst_52 = arith.constant dense<0.000000e+00> : vector<9x8xf32>
    %124 = tpu.matmul %123, %110, %cst_52 {dimension_numbers = #tpu.dot_dimension_numbers<[1], [0], [0], [1], [0, 0, 1, 1], [], []>} : vector<9x9xf32>, vector<9x8xf32>, vector<9x8xf32> -> vector<9x8xf32>
    %125 = vector.extract_strided_slice %46 {offsets = [24, 0], sizes = [8, 32], strides = [1, 1]} : vector<32x32xf32> to vector<8x32xf32>
    %cst_53 = arith.constant dense<0.000000e+00> : vector<9x32xf32>
    %126 = tpu.matmul %124, %125, %cst_53 {dimension_numbers = #tpu.dot_dimension_numbers<[1], [0], [0], [1], [0, 0, 1, 1], [], []>} : vector<9x8xf32>, vector<8x32xf32>, vector<9x32xf32> -> vector<9x32xf32>
    %127 = arith.addf %107, %126 : vector<9x32xf32>
    %128 = arith.addf %13, %127 : vector<9x32xf32>
    %c0_54 = arith.constant 0 : index
    %c0_55 = arith.constant 0 : index
    %c0_56 = arith.constant 0 : index
    %129 = vector.load %arg10[%c0_54, %c0_55, %c0_56] : memref<2x1x32xf32, #tpu.memory_space<vmem>>, vector<1x1x32xf32>
    %130 = vector.shape_cast %129 : vector<1x1x32xf32> to vector<1x32xf32>
    %131 = vector.broadcast %130 : vector<1x32xf32> to vector<9x32xf32>
    %132 = arith.addf %128, %131 : vector<9x32xf32>
    %c0_57 = arith.constant 0 : index
    %c0_58 = arith.constant 0 : index
    %c0_59 = arith.constant 0 : index
    %133 = vector.load %arg11[%c0_57, %c0_58, %c0_59] : memref<2x1x32xf32, #tpu.memory_space<vmem>>, vector<1x1x32xf32>
    %134 = vector.shape_cast %133 : vector<1x1x32xf32> to vector<1x32xf32>
    %c0_60 = arith.constant 0 : index
    %c0_61 = arith.constant 0 : index
    %c0_62 = arith.constant 0 : index
    %135 = vector.load %arg12[%c0_60, %c0_61, %c0_62] : memref<2x1x32xf32, #tpu.memory_space<vmem>>, vector<1x1x32xf32>
    %136 = vector.shape_cast %135 : vector<1x1x32xf32> to vector<1x32xf32>
    %cst_63 = arith.constant dense<0.000000e+00> : vector<9xf32>
    %137 = vector.multi_reduction <add>, %132, %cst_63 [1] : vector<9x32xf32> to vector<9xf32>
    %138 = vector.shape_cast %137 : vector<9xf32> to vector<9x1xf32>
    %cst_64 = arith.constant 3.200000e+01 : f32
    %139 = vector.broadcast %cst_64 : f32 to vector<9x1xf32>
    %140 = arith.divf %138, %139 : vector<9x1xf32>
    %141 = vector.broadcast %140 : vector<9x1xf32> to vector<9x32xf32>
    %142 = arith.subf %132, %141 : vector<9x32xf32>
    %143 = arith.mulf %142, %142 : vector<9x32xf32>
    %cst_65 = arith.constant dense<0.000000e+00> : vector<9xf32>
    %144 = vector.multi_reduction <add>, %143, %cst_65 [1] : vector<9x32xf32> to vector<9xf32>
    %145 = vector.shape_cast %144 : vector<9xf32> to vector<9x1xf32>
    %cst_66 = arith.constant 3.200000e+01 : f32
    %146 = vector.broadcast %cst_66 : f32 to vector<9x1xf32>
    %147 = arith.divf %145, %146 : vector<9x1xf32>
    %cst_67 = arith.constant 9.99999974E-6 : f32
    %148 = vector.broadcast %cst_67 : f32 to vector<9x1xf32>
    %149 = arith.addf %147, %148 : vector<9x1xf32>
    %150 = math.rsqrt %149 : vector<9x1xf32>
    %151 = vector.broadcast %150 : vector<9x1xf32> to vector<9x32xf32>
    %152 = arith.mulf %142, %151 : vector<9x32xf32>
    %153 = vector.broadcast %134 : vector<1x32xf32> to vector<9x32xf32>
    %154 = arith.mulf %152, %153 : vector<9x32xf32>
    %155 = vector.broadcast %136 : vector<1x32xf32> to vector<9x32xf32>
    %156 = arith.addf %154, %155 : vector<9x32xf32>
    %c0_68 = arith.constant 0 : index
    %c0_69 = arith.constant 0 : index
    %c0_70 = arith.constant 0 : index
    %157 = vector.load %arg13[%c0_68, %c0_69, %c0_70] : memref<2x32x128xf32, #tpu.memory_space<vmem>>, vector<1x32x128xf32>
    %158 = vector.shape_cast %157 : vector<1x32x128xf32> to vector<32x128xf32>
    %cst_71 = arith.constant dense<0.000000e+00> : vector<9x128xf32>
    %159 = tpu.matmul %156, %158, %cst_71 {dimension_numbers = #tpu.dot_dimension_numbers<[1], [0], [0], [1], [0, 0, 1, 1], [], []>} : vector<9x32xf32>, vector<32x128xf32>, vector<9x128xf32> -> vector<9x128xf32>
    %c0_72 = arith.constant 0 : index
    %c0_73 = arith.constant 0 : index
    %c0_74 = arith.constant 0 : index
    %160 = vector.load %arg14[%c0_72, %c0_73, %c0_74] : memref<2x1x128xf32, #tpu.memory_space<vmem>>, vector<1x1x128xf32>
    %161 = vector.shape_cast %160 : vector<1x1x128xf32> to vector<1x128xf32>
    %162 = vector.broadcast %161 : vector<1x128xf32> to vector<9x128xf32>
    %163 = arith.addf %159, %162 : vector<9x128xf32>
    %cst_75 = arith.constant 5.000000e-01 : f32
    %164 = vector.broadcast %cst_75 : f32 to vector<9x128xf32>
    %165 = arith.mulf %164, %163 : vector<9x128xf32>
    %cst_76 = arith.constant 0.707106769 : f32
    %166 = vector.broadcast %cst_76 : f32 to vector<9x128xf32>
    %167 = arith.mulf %163, %166 : vector<9x128xf32>
    %168 = math.erf %167 : vector<9x128xf32>
    %cst_77 = arith.constant 1.000000e+00 : f32
    %169 = vector.broadcast %cst_77 : f32 to vector<9x128xf32>
    %170 = arith.addf %169, %168 : vector<9x128xf32>
    %171 = arith.mulf %165, %170 : vector<9x128xf32>
    %c0_78 = arith.constant 0 : index
    %c0_79 = arith.constant 0 : index
    %c0_80 = arith.constant 0 : index
    %172 = vector.load %arg15[%c0_78, %c0_79, %c0_80] : memref<2x128x32xf32, #tpu.memory_space<vmem>>, vector<1x128x32xf32>
    %173 = vector.shape_cast %172 : vector<1x128x32xf32> to vector<128x32xf32>
    %cst_81 = arith.constant dense<0.000000e+00> : vector<9x32xf32>
    %174 = tpu.matmul %171, %173, %cst_81 {dimension_numbers = #tpu.dot_dimension_numbers<[1], [0], [0], [1], [0, 0, 1, 1], [], []>} : vector<9x128xf32>, vector<128x32xf32>, vector<9x32xf32> -> vector<9x32xf32>
    %175 = arith.addf %132, %174 : vector<9x32xf32>
    %c0_82 = arith.constant 0 : index
    %c0_83 = arith.constant 0 : index
    %c0_84 = arith.constant 0 : index
    %176 = vector.load %arg16[%c0_82, %c0_83, %c0_84] : memref<2x1x32xf32, #tpu.memory_space<vmem>>, vector<1x1x32xf32>
    %177 = vector.shape_cast %176 : vector<1x1x32xf32> to vector<1x32xf32>
    %178 = vector.broadcast %177 : vector<1x32xf32> to vector<9x32xf32>
    %179 = arith.addf %175, %178 : vector<9x32xf32>
    %c1 = arith.constant 1 : index
    %c0_85 = arith.constant 0 : index
    %c0_86 = arith.constant 0 : index
    %180 = vector.load %arg5[%c1, %c0_85, %c0_86] : memref<2x1x32xf32, #tpu.memory_space<vmem>>, vector<1x1x32xf32>
    %181 = vector.shape_cast %180 : vector<1x1x32xf32> to vector<1x32xf32>
    %c1_87 = arith.constant 1 : index
    %c0_88 = arith.constant 0 : index
    %c0_89 = arith.constant 0 : index
    %182 = vector.load %arg6[%c1_87, %c0_88, %c0_89] : memref<2x1x32xf32, #tpu.memory_space<vmem>>, vector<1x1x32xf32>
    %183 = vector.shape_cast %182 : vector<1x1x32xf32> to vector<1x32xf32>
    %cst_90 = arith.constant dense<0.000000e+00> : vector<9xf32>
    %184 = vector.multi_reduction <add>, %179, %cst_90 [1] : vector<9x32xf32> to vector<9xf32>
    %185 = vector.shape_cast %184 : vector<9xf32> to vector<9x1xf32>
    %cst_91 = arith.constant 3.200000e+01 : f32
    %186 = vector.broadcast %cst_91 : f32 to vector<9x1xf32>
    %187 = arith.divf %185, %186 : vector<9x1xf32>
    %188 = vector.broadcast %187 : vector<9x1xf32> to vector<9x32xf32>
    %189 = arith.subf %179, %188 : vector<9x32xf32>
    %190 = arith.mulf %189, %189 : vector<9x32xf32>
    %cst_92 = arith.constant dense<0.000000e+00> : vector<9xf32>
    %191 = vector.multi_reduction <add>, %190, %cst_92 [1] : vector<9x32xf32> to vector<9xf32>
    %192 = vector.shape_cast %191 : vector<9xf32> to vector<9x1xf32>
    %cst_93 = arith.constant 3.200000e+01 : f32
    %193 = vector.broadcast %cst_93 : f32 to vector<9x1xf32>
    %194 = arith.divf %192, %193 : vector<9x1xf32>
    %cst_94 = arith.constant 9.99999974E-6 : f32
    %195 = vector.broadcast %cst_94 : f32 to vector<9x1xf32>
    %196 = arith.addf %194, %195 : vector<9x1xf32>
    %197 = math.rsqrt %196 : vector<9x1xf32>
    %198 = vector.broadcast %197 : vector<9x1xf32> to vector<9x32xf32>
    %199 = arith.mulf %189, %198 : vector<9x32xf32>
    %200 = vector.broadcast %181 : vector<1x32xf32> to vector<9x32xf32>
    %201 = arith.mulf %199, %200 : vector<9x32xf32>
    %202 = vector.broadcast %183 : vector<1x32xf32> to vector<9x32xf32>
    %203 = arith.addf %201, %202 : vector<9x32xf32>
    %c1_95 = arith.constant 1 : index
    %c0_96 = arith.constant 0 : index
    %c0_97 = arith.constant 0 : index
    %204 = vector.load %arg7[%c1_95, %c0_96, %c0_97] : memref<2x32x96xf32, #tpu.memory_space<vmem>>, vector<1x32x96xf32>
    %205 = vector.shape_cast %204 : vector<1x32x96xf32> to vector<32x96xf32>
    %cst_98 = arith.constant dense<0.000000e+00> : vector<9x96xf32>
    %206 = tpu.matmul %203, %205, %cst_98 {dimension_numbers = #tpu.dot_dimension_numbers<[1], [0], [0], [1], [0, 0, 1, 1], [], []>} : vector<9x32xf32>, vector<32x96xf32>, vector<9x96xf32> -> vector<9x96xf32>
    %c1_99 = arith.constant 1 : index
    %c0_100 = arith.constant 0 : index
    %c0_101 = arith.constant 0 : index
    %207 = vector.load %arg8[%c1_99, %c0_100, %c0_101] : memref<2x1x96xf32, #tpu.memory_space<vmem>>, vector<1x1x96xf32>
    %208 = vector.shape_cast %207 : vector<1x1x96xf32> to vector<1x96xf32>
    %209 = vector.broadcast %208 : vector<1x96xf32> to vector<9x96xf32>
    %210 = arith.addf %206, %209 : vector<9x96xf32>
    %c1_102 = arith.constant 1 : index
    %c0_103 = arith.constant 0 : index
    %c0_104 = arith.constant 0 : index
    %211 = vector.load %arg9[%c1_102, %c0_103, %c0_104] : memref<2x32x32xf32, #tpu.memory_space<vmem>>, vector<1x32x32xf32>
    %212 = vector.shape_cast %211 : vector<1x32x32xf32> to vector<32x32xf32>
    %cst_105 = arith.constant 0.000000e+00 : f32
    %213 = vector.broadcast %cst_105 : f32 to vector<9x32xf32>
    %214 = vector.extract_strided_slice %210 {offsets = [0, 0], sizes = [9, 8], strides = [1, 1]} : vector<9x96xf32> to vector<9x8xf32>
    %215 = vector.extract_strided_slice %210 {offsets = [0, 32], sizes = [9, 8], strides = [1, 1]} : vector<9x96xf32> to vector<9x8xf32>
    %216 = vector.extract_strided_slice %210 {offsets = [0, 64], sizes = [9, 8], strides = [1, 1]} : vector<9x96xf32> to vector<9x8xf32>
    %cst_106 = arith.constant dense<0.000000e+00> : vector<9x9xf32>
    %217 = tpu.matmul %214, %215, %cst_106 {dimension_numbers = #tpu.dot_dimension_numbers<[1], [1], [0], [0], [0, 0, 1, 0], [], []>} : vector<9x8xf32>, vector<9x8xf32>, vector<9x9xf32> -> vector<9x9xf32>
    %cst_107 = arith.constant 0.353553385 : f32
    %218 = vector.broadcast %cst_107 : f32 to vector<9x9xf32>
    %219 = arith.mulf %217, %218 : vector<9x9xf32>
    %cst_108 = arith.constant dense<0xFF800000> : vector<9xf32>
    %220 = vector.multi_reduction <maximumf>, %219, %cst_108 [1] : vector<9x9xf32> to vector<9xf32>
    %221 = vector.shape_cast %220 : vector<9xf32> to vector<9x1xf32>
    %222 = vector.broadcast %221 : vector<9x1xf32> to vector<9x9xf32>
    %223 = arith.subf %219, %222 : vector<9x9xf32>
    %224 = math.exp %223 : vector<9x9xf32>
    %cst_109 = arith.constant dense<0.000000e+00> : vector<9xf32>
    %225 = vector.multi_reduction <add>, %224, %cst_109 [1] : vector<9x9xf32> to vector<9xf32>
    %226 = vector.shape_cast %225 : vector<9xf32> to vector<9x1xf32>
    %227 = tpu.reciprocal %226 {approx = true} : vector<9x1xf32> -> vector<9x1xf32>
    %228 = vector.broadcast %227 : vector<9x1xf32> to vector<9x9xf32>
    %229 = arith.mulf %224, %228 : vector<9x9xf32>
    %cst_110 = arith.constant dense<0.000000e+00> : vector<9x8xf32>
    %230 = tpu.matmul %229, %216, %cst_110 {dimension_numbers = #tpu.dot_dimension_numbers<[1], [0], [0], [1], [0, 0, 1, 1], [], []>} : vector<9x9xf32>, vector<9x8xf32>, vector<9x8xf32> -> vector<9x8xf32>
    %231 = vector.extract_strided_slice %212 {offsets = [0, 0], sizes = [8, 32], strides = [1, 1]} : vector<32x32xf32> to vector<8x32xf32>
    %cst_111 = arith.constant dense<0.000000e+00> : vector<9x32xf32>
    %232 = tpu.matmul %230, %231, %cst_111 {dimension_numbers = #tpu.dot_dimension_numbers<[1], [0], [0], [1], [0, 0, 1, 1], [], []>} : vector<9x8xf32>, vector<8x32xf32>, vector<9x32xf32> -> vector<9x32xf32>
    %233 = arith.addf %213, %232 : vector<9x32xf32>
    %234 = vector.extract_strided_slice %210 {offsets = [0, 8], sizes = [9, 8], strides = [1, 1]} : vector<9x96xf32> to vector<9x8xf32>
    %235 = vector.extract_strided_slice %210 {offsets = [0, 40], sizes = [9, 8], strides = [1, 1]} : vector<9x96xf32> to vector<9x8xf32>
    %236 = vector.extract_strided_slice %210 {offsets = [0, 72], sizes = [9, 8], strides = [1, 1]} : vector<9x96xf32> to vector<9x8xf32>
    %cst_112 = arith.constant dense<0.000000e+00> : vector<9x9xf32>
    %237 = tpu.matmul %234, %235, %cst_112 {dimension_numbers = #tpu.dot_dimension_numbers<[1], [1], [0], [0], [0, 0, 1, 0], [], []>} : vector<9x8xf32>, vector<9x8xf32>, vector<9x9xf32> -> vector<9x9xf32>
    %cst_113 = arith.constant 0.353553385 : f32
    %238 = vector.broadcast %cst_113 : f32 to vector<9x9xf32>
    %239 = arith.mulf %237, %238 : vector<9x9xf32>
    %cst_114 = arith.constant dense<0xFF800000> : vector<9xf32>
    %240 = vector.multi_reduction <maximumf>, %239, %cst_114 [1] : vector<9x9xf32> to vector<9xf32>
    %241 = vector.shape_cast %240 : vector<9xf32> to vector<9x1xf32>
    %242 = vector.broadcast %241 : vector<9x1xf32> to vector<9x9xf32>
    %243 = arith.subf %239, %242 : vector<9x9xf32>
    %244 = math.exp %243 : vector<9x9xf32>
    %cst_115 = arith.constant dense<0.000000e+00> : vector<9xf32>
    %245 = vector.multi_reduction <add>, %244, %cst_115 [1] : vector<9x9xf32> to vector<9xf32>
    %246 = vector.shape_cast %245 : vector<9xf32> to vector<9x1xf32>
    %247 = tpu.reciprocal %246 {approx = true} : vector<9x1xf32> -> vector<9x1xf32>
    %248 = vector.broadcast %247 : vector<9x1xf32> to vector<9x9xf32>
    %249 = arith.mulf %244, %248 : vector<9x9xf32>
    %cst_116 = arith.constant dense<0.000000e+00> : vector<9x8xf32>
    %250 = tpu.matmul %249, %236, %cst_116 {dimension_numbers = #tpu.dot_dimension_numbers<[1], [0], [0], [1], [0, 0, 1, 1], [], []>} : vector<9x9xf32>, vector<9x8xf32>, vector<9x8xf32> -> vector<9x8xf32>
    %251 = vector.extract_strided_slice %212 {offsets = [8, 0], sizes = [8, 32], strides = [1, 1]} : vector<32x32xf32> to vector<8x32xf32>
    %cst_117 = arith.constant dense<0.000000e+00> : vector<9x32xf32>
    %252 = tpu.matmul %250, %251, %cst_117 {dimension_numbers = #tpu.dot_dimension_numbers<[1], [0], [0], [1], [0, 0, 1, 1], [], []>} : vector<9x8xf32>, vector<8x32xf32>, vector<9x32xf32> -> vector<9x32xf32>
    %253 = arith.addf %233, %252 : vector<9x32xf32>
    %254 = vector.extract_strided_slice %210 {offsets = [0, 16], sizes = [9, 8], strides = [1, 1]} : vector<9x96xf32> to vector<9x8xf32>
    %255 = vector.extract_strided_slice %210 {offsets = [0, 48], sizes = [9, 8], strides = [1, 1]} : vector<9x96xf32> to vector<9x8xf32>
    %256 = vector.extract_strided_slice %210 {offsets = [0, 80], sizes = [9, 8], strides = [1, 1]} : vector<9x96xf32> to vector<9x8xf32>
    %cst_118 = arith.constant dense<0.000000e+00> : vector<9x9xf32>
    %257 = tpu.matmul %254, %255, %cst_118 {dimension_numbers = #tpu.dot_dimension_numbers<[1], [1], [0], [0], [0, 0, 1, 0], [], []>} : vector<9x8xf32>, vector<9x8xf32>, vector<9x9xf32> -> vector<9x9xf32>
    %cst_119 = arith.constant 0.353553385 : f32
    %258 = vector.broadcast %cst_119 : f32 to vector<9x9xf32>
    %259 = arith.mulf %257, %258 : vector<9x9xf32>
    %cst_120 = arith.constant dense<0xFF800000> : vector<9xf32>
    %260 = vector.multi_reduction <maximumf>, %259, %cst_120 [1] : vector<9x9xf32> to vector<9xf32>
    %261 = vector.shape_cast %260 : vector<9xf32> to vector<9x1xf32>
    %262 = vector.broadcast %261 : vector<9x1xf32> to vector<9x9xf32>
    %263 = arith.subf %259, %262 : vector<9x9xf32>
    %264 = math.exp %263 : vector<9x9xf32>
    %cst_121 = arith.constant dense<0.000000e+00> : vector<9xf32>
    %265 = vector.multi_reduction <add>, %264, %cst_121 [1] : vector<9x9xf32> to vector<9xf32>
    %266 = vector.shape_cast %265 : vector<9xf32> to vector<9x1xf32>
    %267 = tpu.reciprocal %266 {approx = true} : vector<9x1xf32> -> vector<9x1xf32>
    %268 = vector.broadcast %267 : vector<9x1xf32> to vector<9x9xf32>
    %269 = arith.mulf %264, %268 : vector<9x9xf32>
    %cst_122 = arith.constant dense<0.000000e+00> : vector<9x8xf32>
    %270 = tpu.matmul %269, %256, %cst_122 {dimension_numbers = #tpu.dot_dimension_numbers<[1], [0], [0], [1], [0, 0, 1, 1], [], []>} : vector<9x9xf32>, vector<9x8xf32>, vector<9x8xf32> -> vector<9x8xf32>
    %271 = vector.extract_strided_slice %212 {offsets = [16, 0], sizes = [8, 32], strides = [1, 1]} : vector<32x32xf32> to vector<8x32xf32>
    %cst_123 = arith.constant dense<0.000000e+00> : vector<9x32xf32>
    %272 = tpu.matmul %270, %271, %cst_123 {dimension_numbers = #tpu.dot_dimension_numbers<[1], [0], [0], [1], [0, 0, 1, 1], [], []>} : vector<9x8xf32>, vector<8x32xf32>, vector<9x32xf32> -> vector<9x32xf32>
    %273 = arith.addf %253, %272 : vector<9x32xf32>
    %274 = vector.extract_strided_slice %210 {offsets = [0, 24], sizes = [9, 8], strides = [1, 1]} : vector<9x96xf32> to vector<9x8xf32>
    %275 = vector.extract_strided_slice %210 {offsets = [0, 56], sizes = [9, 8], strides = [1, 1]} : vector<9x96xf32> to vector<9x8xf32>
    %276 = vector.extract_strided_slice %210 {offsets = [0, 88], sizes = [9, 8], strides = [1, 1]} : vector<9x96xf32> to vector<9x8xf32>
    %cst_124 = arith.constant dense<0.000000e+00> : vector<9x9xf32>
    %277 = tpu.matmul %274, %275, %cst_124 {dimension_numbers = #tpu.dot_dimension_numbers<[1], [1], [0], [0], [0, 0, 1, 0], [], []>} : vector<9x8xf32>, vector<9x8xf32>, vector<9x9xf32> -> vector<9x9xf32>
    %cst_125 = arith.constant 0.353553385 : f32
    %278 = vector.broadcast %cst_125 : f32 to vector<9x9xf32>
    %279 = arith.mulf %277, %278 : vector<9x9xf32>
    %cst_126 = arith.constant dense<0xFF800000> : vector<9xf32>
    %280 = vector.multi_reduction <maximumf>, %279, %cst_126 [1] : vector<9x9xf32> to vector<9xf32>
    %281 = vector.shape_cast %280 : vector<9xf32> to vector<9x1xf32>
    %282 = vector.broadcast %281 : vector<9x1xf32> to vector<9x9xf32>
    %283 = arith.subf %279, %282 : vector<9x9xf32>
    %284 = math.exp %283 : vector<9x9xf32>
    %cst_127 = arith.constant dense<0.000000e+00> : vector<9xf32>
    %285 = vector.multi_reduction <add>, %284, %cst_127 [1] : vector<9x9xf32> to vector<9xf32>
    %286 = vector.shape_cast %285 : vector<9xf32> to vector<9x1xf32>
    %287 = tpu.reciprocal %286 {approx = true} : vector<9x1xf32> -> vector<9x1xf32>
    %288 = vector.broadcast %287 : vector<9x1xf32> to vector<9x9xf32>
    %289 = arith.mulf %284, %288 : vector<9x9xf32>
    %cst_128 = arith.constant dense<0.000000e+00> : vector<9x8xf32>
    %290 = tpu.matmul %289, %276, %cst_128 {dimension_numbers = #tpu.dot_dimension_numbers<[1], [0], [0], [1], [0, 0, 1, 1], [], []>} : vector<9x9xf32>, vector<9x8xf32>, vector<9x8xf32> -> vector<9x8xf32>
    %291 = vector.extract_strided_slice %212 {offsets = [24, 0], sizes = [8, 32], strides = [1, 1]} : vector<32x32xf32> to vector<8x32xf32>
    %cst_129 = arith.constant dense<0.000000e+00> : vector<9x32xf32>
    %292 = tpu.matmul %290, %291, %cst_129 {dimension_numbers = #tpu.dot_dimension_numbers<[1], [0], [0], [1], [0, 0, 1, 1], [], []>} : vector<9x8xf32>, vector<8x32xf32>, vector<9x32xf32> -> vector<9x32xf32>
    %293 = arith.addf %273, %292 : vector<9x32xf32>
    %294 = arith.addf %179, %293 : vector<9x32xf32>
    %c1_130 = arith.constant 1 : index
    %c0_131 = arith.constant 0 : index
    %c0_132 = arith.constant 0 : index
    %295 = vector.load %arg10[%c1_130, %c0_131, %c0_132] : memref<2x1x32xf32, #tpu.memory_space<vmem>>, vector<1x1x32xf32>
    %296 = vector.shape_cast %295 : vector<1x1x32xf32> to vector<1x32xf32>
    %297 = vector.broadcast %296 : vector<1x32xf32> to vector<9x32xf32>
    %298 = arith.addf %294, %297 : vector<9x32xf32>
    %c1_133 = arith.constant 1 : index
    %c0_134 = arith.constant 0 : index
    %c0_135 = arith.constant 0 : index
    %299 = vector.load %arg11[%c1_133, %c0_134, %c0_135] : memref<2x1x32xf32, #tpu.memory_space<vmem>>, vector<1x1x32xf32>
    %300 = vector.shape_cast %299 : vector<1x1x32xf32> to vector<1x32xf32>
    %c1_136 = arith.constant 1 : index
    %c0_137 = arith.constant 0 : index
    %c0_138 = arith.constant 0 : index
    %301 = vector.load %arg12[%c1_136, %c0_137, %c0_138] : memref<2x1x32xf32, #tpu.memory_space<vmem>>, vector<1x1x32xf32>
    %302 = vector.shape_cast %301 : vector<1x1x32xf32> to vector<1x32xf32>
    %cst_139 = arith.constant dense<0.000000e+00> : vector<9xf32>
    %303 = vector.multi_reduction <add>, %298, %cst_139 [1] : vector<9x32xf32> to vector<9xf32>
    %304 = vector.shape_cast %303 : vector<9xf32> to vector<9x1xf32>
    %cst_140 = arith.constant 3.200000e+01 : f32
    %305 = vector.broadcast %cst_140 : f32 to vector<9x1xf32>
    %306 = arith.divf %304, %305 : vector<9x1xf32>
    %307 = vector.broadcast %306 : vector<9x1xf32> to vector<9x32xf32>
    %308 = arith.subf %298, %307 : vector<9x32xf32>
    %309 = arith.mulf %308, %308 : vector<9x32xf32>
    %cst_141 = arith.constant dense<0.000000e+00> : vector<9xf32>
    %310 = vector.multi_reduction <add>, %309, %cst_141 [1] : vector<9x32xf32> to vector<9xf32>
    %311 = vector.shape_cast %310 : vector<9xf32> to vector<9x1xf32>
    %cst_142 = arith.constant 3.200000e+01 : f32
    %312 = vector.broadcast %cst_142 : f32 to vector<9x1xf32>
    %313 = arith.divf %311, %312 : vector<9x1xf32>
    %cst_143 = arith.constant 9.99999974E-6 : f32
    %314 = vector.broadcast %cst_143 : f32 to vector<9x1xf32>
    %315 = arith.addf %313, %314 : vector<9x1xf32>
    %316 = math.rsqrt %315 : vector<9x1xf32>
    %317 = vector.broadcast %316 : vector<9x1xf32> to vector<9x32xf32>
    %318 = arith.mulf %308, %317 : vector<9x32xf32>
    %319 = vector.broadcast %300 : vector<1x32xf32> to vector<9x32xf32>
    %320 = arith.mulf %318, %319 : vector<9x32xf32>
    %321 = vector.broadcast %302 : vector<1x32xf32> to vector<9x32xf32>
    %322 = arith.addf %320, %321 : vector<9x32xf32>
    %c1_144 = arith.constant 1 : index
    %c0_145 = arith.constant 0 : index
    %c0_146 = arith.constant 0 : index
    %323 = vector.load %arg13[%c1_144, %c0_145, %c0_146] : memref<2x32x128xf32, #tpu.memory_space<vmem>>, vector<1x32x128xf32>
    %324 = vector.shape_cast %323 : vector<1x32x128xf32> to vector<32x128xf32>
    %cst_147 = arith.constant dense<0.000000e+00> : vector<9x128xf32>
    %325 = tpu.matmul %322, %324, %cst_147 {dimension_numbers = #tpu.dot_dimension_numbers<[1], [0], [0], [1], [0, 0, 1, 1], [], []>} : vector<9x32xf32>, vector<32x128xf32>, vector<9x128xf32> -> vector<9x128xf32>
    %c1_148 = arith.constant 1 : index
    %c0_149 = arith.constant 0 : index
    %c0_150 = arith.constant 0 : index
    %326 = vector.load %arg14[%c1_148, %c0_149, %c0_150] : memref<2x1x128xf32, #tpu.memory_space<vmem>>, vector<1x1x128xf32>
    %327 = vector.shape_cast %326 : vector<1x1x128xf32> to vector<1x128xf32>
    %328 = vector.broadcast %327 : vector<1x128xf32> to vector<9x128xf32>
    %329 = arith.addf %325, %328 : vector<9x128xf32>
    %cst_151 = arith.constant 5.000000e-01 : f32
    %330 = vector.broadcast %cst_151 : f32 to vector<9x128xf32>
    %331 = arith.mulf %330, %329 : vector<9x128xf32>
    %cst_152 = arith.constant 0.707106769 : f32
    %332 = vector.broadcast %cst_152 : f32 to vector<9x128xf32>
    %333 = arith.mulf %329, %332 : vector<9x128xf32>
    %334 = math.erf %333 : vector<9x128xf32>
    %cst_153 = arith.constant 1.000000e+00 : f32
    %335 = vector.broadcast %cst_153 : f32 to vector<9x128xf32>
    %336 = arith.addf %335, %334 : vector<9x128xf32>
    %337 = arith.mulf %331, %336 : vector<9x128xf32>
    %c1_154 = arith.constant 1 : index
    %c0_155 = arith.constant 0 : index
    %c0_156 = arith.constant 0 : index
    %338 = vector.load %arg15[%c1_154, %c0_155, %c0_156] : memref<2x128x32xf32, #tpu.memory_space<vmem>>, vector<1x128x32xf32>
    %339 = vector.shape_cast %338 : vector<1x128x32xf32> to vector<128x32xf32>
    %cst_157 = arith.constant dense<0.000000e+00> : vector<9x32xf32>
    %340 = tpu.matmul %337, %339, %cst_157 {dimension_numbers = #tpu.dot_dimension_numbers<[1], [0], [0], [1], [0, 0, 1, 1], [], []>} : vector<9x128xf32>, vector<128x32xf32>, vector<9x32xf32> -> vector<9x32xf32>
    %341 = arith.addf %298, %340 : vector<9x32xf32>
    %c1_158 = arith.constant 1 : index
    %c0_159 = arith.constant 0 : index
    %c0_160 = arith.constant 0 : index
    %342 = vector.load %arg16[%c1_158, %c0_159, %c0_160] : memref<2x1x32xf32, #tpu.memory_space<vmem>>, vector<1x1x32xf32>
    %343 = vector.shape_cast %342 : vector<1x1x32xf32> to vector<1x32xf32>
    %344 = vector.broadcast %343 : vector<1x32xf32> to vector<9x32xf32>
    %345 = arith.addf %341, %344 : vector<9x32xf32>
    %346 = vector.extract_strided_slice %345 {offsets = [0, 0], sizes = [1, 32], strides = [1, 1]} : vector<9x32xf32> to vector<1x32xf32>
    %c0_161 = arith.constant 0 : index
    %c0_162 = arith.constant 0 : index
    %347 = vector.load %arg17[%c0_161, %c0_162] : memref<1x32xf32, #tpu.memory_space<vmem>>, vector<1x32xf32>
    %c0_163 = arith.constant 0 : index
    %c0_164 = arith.constant 0 : index
    %348 = vector.load %arg18[%c0_163, %c0_164] : memref<1x32xf32, #tpu.memory_space<vmem>>, vector<1x32xf32>
    %cst_165 = arith.constant dense<0.000000e+00> : vector<1xf32>
    %349 = vector.multi_reduction <add>, %346, %cst_165 [1] : vector<1x32xf32> to vector<1xf32>
    %350 = vector.shape_cast %349 : vector<1xf32> to vector<1x1xf32>
    %cst_166 = arith.constant 3.200000e+01 : f32
    %351 = vector.broadcast %cst_166 : f32 to vector<1x1xf32>
    %352 = arith.divf %350, %351 : vector<1x1xf32>
    %353 = vector.broadcast %352 : vector<1x1xf32> to vector<1x32xf32>
    %354 = arith.subf %346, %353 : vector<1x32xf32>
    %355 = arith.mulf %354, %354 : vector<1x32xf32>
    %cst_167 = arith.constant dense<0.000000e+00> : vector<1xf32>
    %356 = vector.multi_reduction <add>, %355, %cst_167 [1] : vector<1x32xf32> to vector<1xf32>
    %357 = vector.shape_cast %356 : vector<1xf32> to vector<1x1xf32>
    %cst_168 = arith.constant 3.200000e+01 : f32
    %358 = vector.broadcast %cst_168 : f32 to vector<1x1xf32>
    %359 = arith.divf %357, %358 : vector<1x1xf32>
    %cst_169 = arith.constant 9.99999974E-6 : f32
    %360 = vector.broadcast %cst_169 : f32 to vector<1x1xf32>
    %361 = arith.addf %359, %360 : vector<1x1xf32>
    %362 = math.rsqrt %361 : vector<1x1xf32>
    %363 = vector.broadcast %362 : vector<1x1xf32> to vector<1x32xf32>
    %364 = arith.mulf %354, %363 : vector<1x32xf32>
    %365 = arith.mulf %364, %347 : vector<1x32xf32>
    %366 = arith.addf %365, %348 : vector<1x32xf32>
    %c0_170 = arith.constant 0 : index
    %c0_171 = arith.constant 0 : index
    %367 = vector.load %arg19[%c0_170, %c0_171] : memref<32x10xf32, #tpu.memory_space<vmem>>, vector<32x10xf32>
    %cst_172 = arith.constant dense<0.000000e+00> : vector<1x10xf32>
    %368 = tpu.matmul %366, %367, %cst_172 {dimension_numbers = #tpu.dot_dimension_numbers<[1], [0], [0], [1], [0, 0, 1, 1], [], []>} : vector<1x32xf32>, vector<32x10xf32>, vector<1x10xf32> -> vector<1x10xf32>
    %c0_173 = arith.constant 0 : index
    %c0_174 = arith.constant 0 : index
    %369 = vector.load %arg20[%c0_173, %c0_174] : memref<1x10xf32, #tpu.memory_space<vmem>>, vector<1x10xf32>
    %370 = arith.addf %368, %369 : vector<1x10xf32>
    %c0_175 = arith.constant 0 : index
    %c0_176 = arith.constant 0 : index
    %c0_177 = arith.constant 0 : index
    %371 = vector.load %arg21[%c0_175, %c0_176, %c0_177] : memref<1x1x10xf32, #tpu.memory_space<vmem>>, vector<1x1x10xf32>
    %372 = vector.shape_cast %371 : vector<1x1x10xf32> to vector<1x10xf32>
    %373 = vector.shape_cast %370 : vector<1x10xf32> to vector<1x1x10xf32>
    tpu.vector_store %arg21[%c0_175, %c0_176, %c0_177], %373 {strides = array<i32>} : memref<1x1x10xf32, #tpu.memory_space<vmem>>, vector<1x1x10xf32>,
    return
  }
  func.func @transform_0(%arg0: i32) -> (i32, i32, i32) {
    %c0_i32 = arith.constant 0 : i32
    %c0_i32_0 = arith.constant 0 : i32
    %c0_i32_1 = arith.constant 0 : i32
    return %arg0, %c0_i32, %c0_i32_0 : i32, i32, i32
  }
  func.func @transform_1(%arg0: i32) -> (i32, i32) {
    %c0_i32 = arith.constant 0 : i32
    %c0_i32_0 = arith.constant 0 : i32
    %c0_i32_1 = arith.constant 0 : i32
    return %c0_i32, %c0_i32_0 : i32, i32
  }
  func.func @transform_2(%arg0: i32) -> (i32, i32) {
    %c0_i32 = arith.constant 0 : i32
    %c0_i32_0 = arith.constant 0 : i32
    %c0_i32_1 = arith.constant 0 : i32
    return %c0_i32, %c0_i32_0 : i32, i32
  }
  func.func @transform_3(%arg0: i32) -> (i32, i32) {
    %c0_i32 = arith.constant 0 : i32
    %c0_i32_0 = arith.constant 0 : i32
    %c0_i32_1 = arith.constant 0 : i32
    return %c0_i32, %c0_i32_0 : i32, i32
  }
  func.func @transform_4(%arg0: i32) -> (i32, i32, i32) {
    %c0_i32 = arith.constant 0 : i32
    %c0_i32_0 = arith.constant 0 : i32
    %c0_i32_1 = arith.constant 0 : i32
    %c0_i32_2 = arith.constant 0 : i32
    return %c0_i32, %c0_i32_0, %c0_i32_1 : i32, i32, i32
  }
  func.func @transform_5(%arg0: i32) -> (i32, i32, i32) {
    %c0_i32 = arith.constant 0 : i32
    %c0_i32_0 = arith.constant 0 : i32
    %c0_i32_1 = arith.constant 0 : i32
    %c0_i32_2 = arith.constant 0 : i32
    return %c0_i32, %c0_i32_0, %c0_i32_1 : i32, i32, i32
  }
  func.func @transform_6(%arg0: i32) -> (i32, i32, i32) {
    %c0_i32 = arith.constant 0 : i32
    %c0_i32_0 = arith.constant 0 : i32
    %c0_i32_1 = arith.constant 0 : i32
    %c0_i32_2 = arith.constant 0 : i32
    return %c0_i32, %c0_i32_0, %c0_i32_1 : i32, i32, i32
  }
  func.func @transform_7(%arg0: i32) -> (i32, i32, i32) {
    %c0_i32 = arith.constant 0 : i32
    %c0_i32_0 = arith.constant 0 : i32
    %c0_i32_1 = arith.constant 0 : i32
    %c0_i32_2 = arith.constant 0 : i32
    return %c0_i32, %c0_i32_0, %c0_i32_1 : i32, i32, i32
  }
  func.func @transform_8(%arg0: i32) -> (i32, i32, i32) {
    %c0_i32 = arith.constant 0 : i32
    %c0_i32_0 = arith.constant 0 : i32
    %c0_i32_1 = arith.constant 0 : i32
    %c0_i32_2 = arith.constant 0 : i32
    return %c0_i32, %c0_i32_0, %c0_i32_1 : i32, i32, i32
  }
  func.func @transform_9(%arg0: i32) -> (i32, i32, i32) {
    %c0_i32 = arith.constant 0 : i32
    %c0_i32_0 = arith.constant 0 : i32
    %c0_i32_1 = arith.constant 0 : i32
    %c0_i32_2 = arith.constant 0 : i32
    return %c0_i32, %c0_i32_0, %c0_i32_1 : i32, i32, i32
  }
  func.func @transform_10(%arg0: i32) -> (i32, i32, i32) {
    %c0_i32 = arith.constant 0 : i32
    %c0_i32_0 = arith.constant 0 : i32
    %c0_i32_1 = arith.constant 0 : i32
    %c0_i32_2 = arith.constant 0 : i32
    return %c0_i32, %c0_i32_0, %c0_i32_1 : i32, i32, i32
  }
  func.func @transform_11(%arg0: i32) -> (i32, i32, i32) {
    %c0_i32 = arith.constant 0 : i32
    %c0_i32_0 = arith.constant 0 : i32
    %c0_i32_1 = arith.constant 0 : i32
    %c0_i32_2 = arith.constant 0 : i32
    return %c0_i32, %c0_i32_0, %c0_i32_1 : i32, i32, i32
  }
  func.func @transform_12(%arg0: i32) -> (i32, i32, i32) {
    %c0_i32 = arith.constant 0 : i32
    %c0_i32_0 = arith.constant 0 : i32
    %c0_i32_1 = arith.constant 0 : i32
    %c0_i32_2 = arith.constant 0 : i32
    return %c0_i32, %c0_i32_0, %c0_i32_1 : i32, i32, i32
  }
  func.func @transform_13(%arg0: i32) -> (i32, i32, i32) {
    %c0_i32 = arith.constant 0 : i32
    %c0_i32_0 = arith.constant 0 : i32
    %c0_i32_1 = arith.constant 0 : i32
    %c0_i32_2 = arith.constant 0 : i32
    return %c0_i32, %c0_i32_0, %c0_i32_1 : i32, i32, i32
  }
  func.func @transform_14(%arg0: i32) -> (i32, i32, i32) {
    %c0_i32 = arith.constant 0 : i32
    %c0_i32_0 = arith.constant 0 : i32
    %c0_i32_1 = arith.constant 0 : i32
    %c0_i32_2 = arith.constant 0 : i32
    return %c0_i32, %c0_i32_0, %c0_i32_1 : i32, i32, i32
  }
  func.func @transform_15(%arg0: i32) -> (i32, i32, i32) {
    %c0_i32 = arith.constant 0 : i32
    %c0_i32_0 = arith.constant 0 : i32
    %c0_i32_1 = arith.constant 0 : i32
    %c0_i32_2 = arith.constant 0 : i32
    return %c0_i32, %c0_i32_0, %c0_i32_1 : i32, i32, i32
  }
  func.func @transform_16(%arg0: i32) -> (i32, i32) {
    %c0_i32 = arith.constant 0 : i32
    %c0_i32_0 = arith.constant 0 : i32
    %c0_i32_1 = arith.constant 0 : i32
    return %c0_i32, %c0_i32_0 : i32, i32
  }
  func.func @transform_17(%arg0: i32) -> (i32, i32) {
    %c0_i32 = arith.constant 0 : i32
    %c0_i32_0 = arith.constant 0 : i32
    %c0_i32_1 = arith.constant 0 : i32
    return %c0_i32, %c0_i32_0 : i32, i32
  }
  func.func @transform_18(%arg0: i32) -> (i32, i32) {
    %c0_i32 = arith.constant 0 : i32
    %c0_i32_0 = arith.constant 0 : i32
    %c0_i32_1 = arith.constant 0 : i32
    return %c0_i32, %c0_i32_0 : i32, i32
  }
  func.func @transform_19(%arg0: i32) -> (i32, i32) {
    %c0_i32 = arith.constant 0 : i32
    %c0_i32_0 = arith.constant 0 : i32
    %c0_i32_1 = arith.constant 0 : i32
    return %c0_i32, %c0_i32_0 : i32, i32
  }
  func.func @transform_20(%arg0: i32) -> (i32, i32, i32) {
    %c0_i32 = arith.constant 0 : i32
    %c0_i32_0 = arith.constant 0 : i32
    %c0_i32_1 = arith.constant 0 : i32
    return %arg0, %c0_i32, %c0_i32_0 : i32, i32, i32
  }
}

</mosaic_0001>

<bundles_post_ra>
// kernel: vit_forward.1
= control target key start
LH: loop header
LB: loop body
LE: loop exit
PB: predicated region body
PF: predicated region fallthrough
CT: control target
= control target key end

     0   :  { %s5986_s0 = inlined_call_operand.vmem [shape: f32[2,9,192], index: 0, kind: input, shape index: {}]   ;;  %s5987_s1 = inlined_call_operand.vmem [shape: f32[192,32], index: 1, kind: input, shape index: {}]   ;;  %s5988_s2 = inlined_call_operand.vmem [shape: f32[1,32], index: 2, kind: input, shape index: {}]   ;;  %s5989_s3 = inlined_call_operand.vmem [shape: f32[1,32], index: 3, kind: input, shape index: {}]   ;;  %s5990_s4 = inlined_call_operand.vmem [shape: f32[2,1,32], index: 4, kind: input, shape index: {}]   ;;  %s5991_s5 = inlined_call_operand.vmem [shape: f32[2,1,32], index: 5, kind: input, shape index: {}]   ;;  %s5992_s6 = inlined_call_operand.vmem [shape: f32[2,32,96], index: 6, kind: input, shape index: {}]   ;;  %s5993_s7 = inlined_call_operand.vmem [shape: f32[2,1,96], index: 7, kind: input, shape index: {}]   ;;  %s5994_s8 = inlined_call_operand.vmem [shape: f32[2,32,32], index: 8, kind: input, shape index: {}]   ;;  %s5995_s9 = inlined_call_operand.vmem [shape: f32[2,1,32], index: 9, kind: input, shape index: {}]   ;;  %s5996_s10 = inlined_call_operand.vmem [shape: f32[2,1,32], index: 10, kind: input, shape index: {}]   ;;  %s5997_s11 = inlined_call_operand.vmem [shape: f32[2,1,32], index: 11, kind: input, shape index: {}]   ;;  %s5998_s12 = inlined_call_operand.vmem [shape: f32[2,32,128], index: 12, kind: input, shape index: {}]   ;;  %s5999_s13 = inlined_call_operand.vmem [shape: f32[2,1,128], index: 13, kind: input, shape index: {}]   ;;  %s6000_s14 = inlined_call_operand.vmem [shape: f32[2,128,32], index: 14, kind: input, shape index: {}]   ;;  %s6001_s15 = inlined_call_operand.vmem [shape: f32[2,1,32], index: 15, kind: input, shape index: {}]   ;;  %s6002_s16 = inlined_call_operand.vmem [shape: f32[1,32], index: 16, kind: input, shape index: {}]   ;;  %s6003_s17 = inlined_call_operand.vmem [shape: f32[1,32], index: 17, kind: input, shape index: {}]   ;;  %s6004_s18 = inlined_call_operand.vmem [shape: f32[32,10], index: 18, kind: input, shape index: {}]   ;;  %s6005_s19 = inlined_call_operand.vmem [shape: f32[1,10], index: 19, kind: input, shape index: {}]   ;;  %s6006_s20 = inlined_call_operand.hbm [shape: f32[2,1,10], index: 20, kind: output, shape index: {}]  }
   0x1   :  { %6026 = sst [smem:[#allocation11_spill]] %s5986_s0 }
   0x2   :  { %6027 = sst [smem:[#allocation12_spill]] %s5987_s1 }
   0x3   :  { %6028 = sst [smem:[#allocation13_spill]] %s5988_s2 }
   0x4   :  { %6029 = sst [smem:[#allocation14_spill]] %s5989_s3 }
   0x5   :  { %6030 = sst [smem:[#allocation15_spill]] %s5990_s4 }
   0x6   :  { %6031 = sst [smem:[#allocation16_spill]] %s5991_s5 }
   0x7   :  { %6032 = sst [smem:[#allocation17_spill]] %s6006_s20 }
   0x8   :  { %25 = vsyncpa [#allocation3], 0 }
   0x9   :  { %27 = vsyncpa [#allocation3 + $0x1], 0  ;;  %s5245_s1 = smov 0   ;;  %s5247_s22 = smov 0  }
   0xa   :  { %s5249_s23 = smov 0   ;;  %s5251_s24 = smov 0  }
   0xb LB: > { %6033 = sst [smem:[#allocation5_spill]] %s5110_s1  ;;  %s5266_s2 = sadd.s32 4294967295, %s5122_s24   ;;  %s5122_s24 = sphi %s5251_s24, %s6063_s24   ;;  %s5118_s23 = sphi %s5249_s23, %s6065_s23   ;;  %s5114_s22 = sphi %s5247_s22, %s6067_s22   ;;  %s5110_s1 = sphi %s5245_s1, %s6066_s1  }
   0xc   : > { %6034 = sst [smem:[#allocation6_spill]] %s5118_s23  ;;  %s4013_s25 = sadd.s32 4294967294, %s5122_s24  }
   0xd   : > { %6035 = sst [smem:[#allocation7_spill]] %s5122_s24  ;;  %s5270_s3 = sadd.s32 1, %s5122_s24  }
   0xe   : > { %6036 = sst [smem:[#allocation8_spill]] %s5270_s3  ;;  %s465_s26 = sadd.s32 1, %s5118_s23 }
   0xf   : > { %s462_s27 = ssub.s32 %s5122_s24, %s5270_s3  ;;  %p475_p0 = scmp.ne.s32.totalorder %s5118_s23, %s5114_s22 }
  0x10   : > { %p463_p1 = scmp.eq.s32.totalorder %s462_s27, 0  ;;  %p476_p2 = scmp.eq.s32.totalorder %s5266_s2, 1 }
  0x11   : > { %p481_p3 = scmp.ne.s32.totalorder %s5114_s22, %s5110_s1  ;;  %p482_p4 = scmp.eq.s32.totalorder %s4013_s25, 1 }
  0x12   : > { %s5281_s28 = scalar_select %p463_p1, %s5118_s23, %s465_s26  }
  0x13   : > { %p5283_p5 = por %p476_p2, %p475_p0  ;;  %p5287_p6 = por %p482_p4, %p481_p3 }
  0x14   : > { %6037 = sst [smem:[#allocation9_spill]] %s5281_s28  ;;  %p4016_p7 = scmp.ge.s32.totalorder %s5122_s24, 1 }
  0x15   : > { %s6039_s29 = scalar_select %p5287_p6, 1, 0 }
  0x16   : > { %p565_p8 = scmp.lt.s32.totalorder %s5122_s24, 3 }
  0x17   : > { %6040 = sst [smem:[#allocation10_spill]] %s6039_s29 }
  0x18   : > { %p566_p9 = pnand %p4016_p7, %p565_p8 }
  0x19   : > { %s6041_s21 = sld [smem:[#allocation12_spill]] (!%p566_p9)  ;;  %p622_p10 = scmp.lt.s32.totalorder (!%p566_p9), %s5266_s2, 1  ;;  %v5124_v3 = vmov (!%p566_p9), 0.0|0.0   ;;  %vm662_vm0 = vcmask (!%p566_p9), 523264   ;;  %v744_v41 = vlaneseq (!%p566_p9)  ;;  %vm760_vm2 = vcmask (!%p566_p9), 261120  }
  0x1a   : > { %569 = sbr.rel (%p566_p9) target bundleno = 8459 (0x210b), region = 100  ;;  %4590 = vmatprep.subr.bf16.mxu0 (!%p566_p9), %v5124_v3  ;;  %s6042_s24 = sld [smem:[#allocation11_spill]] (!%p566_p9)  ;;  %vm764_vm3 = vcmask (!%p566_p9), 253952   ;;  %vm907_vm4 = vcmask (!%p566_p9), 64512   ;;  %vm993_vm6 = vcmask (!%p566_p9), 72704   ;;  %vm997_vm7 = vcmask (!%p566_p9), 65536  }
  0x1b   : > { %v745_v42 = vshrl.u32 (!%p566_p9), %v744_v41, 7  ;;  %s6044_s28 = sld [smem:[#allocation14_spill]] (!%p566_p9)  ;;  %s6046_s5 = sld [smem:[#allocation16_spill]] (!%p566_p9)  ;;  %vm5451_vm5 = vmpackc.low (!%p566_p9), %vm907_vm4, %vm907_vm4  ;;  %vm1028_vm8 = vcmask (!%p566_p9), 1040384   ;;  %vm5129_vm9 = vmmov (!%p566_p9), 1   ;;  %vm5137_vm11 = vmmov (!%p566_p9), 0  }
  0x1c   : > { %s5125_s23 = smov (!%p566_p9), 96   ;;  %s5126_s3 = smov (!%p566_p9), 88   ;;  %vm5467_vm10 = vmpackc.low (!%p566_p9), %vm1028_vm8, %vm5129_vm9  ;;  %vm3943_vm12 = vcmask (!%p566_p9), 73728  }
  0x1d   : > { %vm754_vm1 = vcmp.eq.s32.totalorder (!%p566_p9), %v745_v42, 0  ;;  %s5127_s0 = smov (!%p566_p9), 120   ;;  %s6025_s25 = smov (!%p566_p9), 64  }
  0x1e   : > { %s6024_s1 = smov (!%p566_p9), 56   ;;  %s6021_s29 = smov (!%p566_p9), 72  }
  0x1f   : > { %v631_v0 = vld [vmem:[%s6041_s21] sm:$0xff] (!%p566_p9)  ;;  %v632_v1 = vld [vmem:[%s6041_s21 + $0x8] sm:$0xff] (!%p566_p9)  ;;  %v633_v2 = vld [vmem:[%s6041_s21 + $0x10] sm:$0xff] (!%p566_p9)  ;;  %s6056_s26 = smov (!%p566_p9), 80  }
  0x20   : > { %v4591_v4 = vpack.c.bf16 (!%p566_p9), %v632_v1, %v631_v0  ;;  %v634_v5 = vld [vmem:[%s6041_s21 + $0x18] sm:$0xff] (!%p566_p9)  ;;  %v635_v7 = vld [vmem:[%s6041_s21 + $0x20] sm:$0xff] (!%p566_p9)  ;;  %v636_v8 = vld [vmem:[%s6041_s21 + $0x28] sm:$0xff] (!%p566_p9) }
  0x21   : > { %s623_s30 = scalar_select %p622_p10, %s5266_s2, 1  ;;  %v4594_v6 = vpack.c.bf16 %v634_v5, %v633_v2  ;;  %v4597_v9 = vpack.c.bf16 %v636_v8, %v635_v7  ;;  %v637_v10 = vld [vmem:[%s6041_s21 + $0x30] sm:$0xff]  ;;  %v638_v11 = vld [vmem:[%s6041_s21 + $0x38] sm:$0xff]  ;;  %v639_v14 = vld [vmem:[%s6041_s21 + $0x40] sm:$0xff] }
  0x22   : > { %4592 = vmatpush1.bf16.msra.mxu0 %v4591_v4  ;;  %v4600_v13 = vpack.c.bf16 %v638_v11, %v637_v10  ;;  %v640_v15 = vld [vmem:[%s6041_s21 + $0x48] sm:$0xff]  ;;  %v641_v17 = vld [vmem:[%s6041_s21 + $0x50] sm:$0xff]  ;;  %v642_v18 = vld [vmem:[%s6041_s21 + $0x58] sm:$0xff] }
  0x23   : > { %4593 = vmatprep.subr.bf16.mxu0 %v5124_v3  ;;  %s4159_s27 = sshll.u32 %s623_s30, 5  ;;  %v4603_v16 = vpack.c.bf16 %v640_v15, %v639_v14  ;;  %v4606_v19 = vpack.c.bf16 %v642_v18, %v641_v17  ;;  %v643_v20 = vld [vmem:[%s6041_s21 + $0x60] sm:$0xff]  ;;  %v644_v21 = vld [vmem:[%s6041_s21 + $0x68] sm:$0xff]  ;;  %v645_v23 = vld [vmem:[%s6041_s21 + $0x70] sm:$0xff]  ;;  %s6045_s30 = sld [smem:[#allocation15_spill]] }
  0x24   : > { %s5318_s20 = scalar_lea.vmem %s6042_s24, %s4159_s27  ;;  %v4609_v22 = vpack.c.bf16 %v644_v21, %v643_v20  ;;  %v646_v24 = vld [vmem:[%s6041_s21 + $0x78] sm:$0xff]  ;;  %v647_v26 = vld [vmem:[%s6041_s21 + $0x80] sm:$0xff]  ;;  %v648_v27 = vld [vmem:[%s6041_s21 + $0x88] sm:$0xff]  ;;  %s6043_s24 = sld [smem:[#allocation13_spill]] }
  0x25   : > { %v628_v12 = vld [vmem:[%s5318_s20 + $0x8] sm:$0xff]  ;;  %v4612_v25 = vpack.c.bf16 %v646_v24, %v645_v23  ;;  %v4615_v28 = vpack.c.bf16 %v648_v27, %v647_v26  ;;  %v649_v29 = vld [vmem:[%s6041_s21 + $0x90] sm:$0xff]  ;;  %v650_v30 = vld [vmem:[%s6041_s21 + $0x98] sm:$0xff] }
  0x26   : > { %4595 = vmatpush1.bf16.msra.mxu0 %v4594_v6  ;;  %4020 = vmatprep.mubr.msk.f32.mxu0 %vm662_vm0, %v628_v12  ;;  %v4618_v31 = vpack.c.bf16 %v650_v30, %v649_v29  ;;  %v651_v32 = vld [vmem:[%s6041_s21 + $0xa0] sm:$0xff]  ;;  %v652_v33 = vld [vmem:[%s6041_s21 + $0xa8] sm:$0xff]  ;;  %v653_v35 = vld [vmem:[%s6041_s21 + $0xb0] sm:$0xff] }
  0x27   : > { %4596 = vmatprep.subr.bf16.mxu0 %v5124_v3  ;;  %v4621_v34 = vpack.c.bf16 %v652_v33, %v651_v32  ;;  %v654_v36 = vld [vmem:[%s6041_s21 + $0xb8] sm:$0xff]  ;;  %v627_v38 = vld [vmem:[%s5318_s20] sm:$0xff]  ;;  %v629_v40 = vld [vmem:[%s5318_s20 + $0x10] sm:$0x1] }
  0x28   : > { %v4624_v37 = vpack.c.bf16 %v654_v36, %v653_v35  ;;  %v630_v39 = vld [vmem:[%s5318_s20 + $0x18] sm:$0x1]  ;;  %v4022_v45 = vld [vmem:[%s6044_s28] ss:$0 sm:$0xff]  ;;  %v806_v1 = vld [vmem:[%s5992_s6 + $0x8] sm:$0xff]  ;;  %s6017_s28 = smov 104  }
  0x29   : > { %v805_v0 = vld [vmem:[%s5992_s6] sm:$0xff]  ;;  %v807_v2 = vld [vmem:[%s5992_s6 + $0x10] sm:$0xff]  ;;  %v808_v5 = vld [vmem:[%s5992_s6 + $0x18] sm:$0xff]  ;;  %s6016_s20 = smov 80  }
  0x2a   : > { %4598 = vmatpush1.bf16.msra.mxu0 %v4597_v9  ;;  %v4019_v43 = vld [vmem:[%s6043_s24] ss:$0 sm:$0xff]  ;;  %v4626_v4 = vpack.c.bf16 %v806_v1, %v805_v0  ;;  %v4630_v6 = vpack.c.bf16 %v808_v5, %v807_v2  ;;  %s6022_s24 = smov 112  }
  0x2b   : > { %4599 = vmatprep.subr.bf16.mxu0 %v5124_v3  ;;  %v4023_v14 = vld [vmem:[%s6045_s30] ss:$0 sm:$0xff] }
  0x2c   : > { %4627 = vmatprep.subr.bf16.mxu1 %v4626_v4  ;;  %v4025_v23 = vld [vmem:[%s5993_s7] ss:$0 sm:$0xff] }
  0x2d   : > { %4629 = vmatpush3.bf16.msra.mxu1 %v4626_v4 }
  0x2e   : > { %4601 = vmatpush1.bf16.msra.mxu0 %v4600_v13  ;;  %4631 = vmatprep.subr.bf16.mxu1 %v4630_v6 }
  0x2f   : > { %4602 = vmatprep.subr.bf16.mxu0 %v5124_v3 }
  0x31   : > { %4633 = vmatpush3.bf16.msra.mxu1 %v4630_v6 }
  0x32   : > { %4604 = vmatpush1.bf16.msra.mxu0 %v4603_v16  ;;  %v4024_v16 = vld [vmem:[%s6046_s5] ss:$0 sm:$0xff] }
  0x33   : > { %4605 = vmatprep.subr.bf16.mxu0 %v5124_v3 }
  0x36   : > { %4607 = vmatpush1.bf16.msra.mxu0 %v4606_v19 }
  0x37   : > { %4608 = vmatprep.subr.bf16.mxu0 %v5124_v3 }
  0x3a   : > { %4610 = vmatpush1.bf16.msra.mxu0 %v4609_v22 }
  0x3b   : > { %4611 = vmatprep.subr.bf16.mxu0 %v5124_v3 }
  0x3e   : > { %4613 = vmatpush1.bf16.msra.mxu0 %v4612_v25 }
  0x3f   : > { %4614 = vmatprep.subr.bf16.mxu0 %v5124_v3 }
  0x42   : > { %4616 = vmatpush1.bf16.msra.mxu0 %v4615_v28 }
  0x43   : > { %4617 = vmatprep.subr.bf16.mxu0 %v5124_v3 }
  0x46   : > { %4619 = vmatpush1.bf16.msra.mxu0 %v4618_v31 }
  0x47   : > { %4620 = vmatprep.subr.bf16.mxu0 %v5124_v3 }
  0x4a   : > { %4622 = vmatpush1.bf16.msra.mxu0 %v4621_v34 }
  0x4b   : > { %4623 = vmatprep.subr.bf16.mxu0 %v5124_v3 }
  0x4e   : > { %4625 = vmatpush1.bf16.msra.mxu0 %v4624_v37 }
  0x51   : > { %734 = vmatmul.mubr.f32.vlgmr.msra.gmra.mrb[0].mxu0 %v627_v38 }
  0x52   : > { %4021 = vmatprep.mubr.msk.f32.mxu0 %vm662_vm0, %v630_v39 }
  0x55   : > { %739 = vmatmul.mubr.f32.gmra.mrb[2].mxu0 %v629_v40 }
 0x124   : > { %v735_v44 = vpop.f32.mrb[0].mxu0 }
 0x125   : > { %v736_v46 = vadd.f32 %v4019_v43, %v735_v44  ;;  %v737_v47 = vpop.f32.mrb[1].mxu0 }
 0x127   : > { %v5396_v48 = vsel %vm754_vm1, %v4022_v45, %v736_v46 }
 0x128   : > { %v740_v49 = vpop.f32.mrb[2].mxu0  ;;  %v761_v50 = vsel %vm760_vm2, %v5396_v48, 0.0 }
 0x129   : > { %v5400_v51 = vadd.f32 %v4019_v43, %v740_v49  ;;  %v742_v52 = vpop.f32.mrb[3].mxu0  ;;  %762 = vadd.xlane.f32.xlu0 %v761_v50 }
 0x12b   : > { %v765_v53 = vsel %vm764_vm3, %v5400_v51, 0.0 }
 0x12d   : > { %766 = vadd.xlane.f32.xlu0 %v765_v53 }
 0x1b6   : > { %v763_v54 = vpop.xlane.xlu0 %762 }
 0x1b7   : > { %v769_v55 = vmul.f32 0.03125, %v763_v54 }
 0x1b9   : > { %v771_v56 = vsub.f32 %v5396_v48, %v769_v55 }
 0x1ba   : > { %v767_v57 = vpop.xlane.xlu0 %766 }
 0x1bb   : > { %v770_v58 = vmul.f32 0.03125, %v767_v57  ;;  %v773_v59 = vmul.f32 %v771_v56, %v771_v56 }
 0x1bd   : > { %v772_v60 = vsub.f32 %v5400_v51, %v770_v58  ;;  %v775_v61 = vsel %vm760_vm2, %v773_v59, 0.0 }
 0x1be   : > { %776 = vadd.xlane.f32.xlu1 %v775_v61 }
 0x1bf   : > { %v774_v62 = vmul.f32 %v772_v60, %v772_v60 }
 0x1c1   : > { %v778_v63 = vsel %vm764_vm3, %v774_v62, 0.0 }
 0x1c2   : > { %779 = vadd.xlane.f32.xlu1 %v778_v63 }
 0x24b   : > { %v777_v7 = vpop.xlane.xlu1 %776 }
 0x24c   : > { %v781_v8 = vmul.f32 0.03125, %v777_v7 }
 0x24e   : > { %v783_v9 = vadd.f32 1e-05, %v781_v8 }
 0x24f   : > { %v780_v10 = vpop.xlane.xlu1 %779 }
 0x250   : > { %4970 = vrsqrt.f32 %v783_v9  ;;  %v782_v11 = vmul.f32 0.03125, %v780_v10 }
 0x252   : > { %v784_v12 = vadd.f32 1e-05, %v782_v11 }
 0x254   : > { %4972 = vrsqrt.f32 %v784_v12 }
 0x25a   : > { %v4971_v13 = vpop.eup %4970 }
 0x25b   : > { %v787_v15 = vmul.f32 %v4971_v13, %v771_v56 }
 0x25d   : > { %v795_v17 = vmul.f32 %v4023_v14, %v787_v15 }
 0x25e   : > { %v4973_v18 = vpop.eup %4972 }
 0x25f   : > { %v788_v19 = vmul.f32 %v4973_v18, %v772_v60  ;;  %v803_v20 = vadd.f32 %v4024_v16, %v795_v17 }
 0x261   : > { %v796_v21 = vmul.f32 %v4023_v14, %v788_v19  ;;  %4321 = vmatprep.mubr.msk.f32.mxu1 %vm760_vm2, %v803_v20 }
 0x263   : > { %v804_v22 = vadd.f32 %v4024_v16, %v796_v21 }
 0x265   : > { %4322 = vmatmul.mubr.msk.f32.vlgmr.msra.gmra.mrb[0].mxu1 %vm760_vm2, %v804_v22 }
 0x338   : > { %v4323_v24 = vpop.f32.mrb[0].mxu1 }
 0x339   : > { %v5431_v25 = vadd.f32 %v4323_v24, %v4025_v23  ;;  %v888_v26 = vpop.f32.mrb[1].mxu1 }
 0x33a   : > { %v5433_v27 = vadd.f32 %v4025_v23, %v888_v26 }
 0x33c   : > { %4328 = vmatprep.mubr.msk.f32.mxu1 %vm907_vm4, %v5433_v27  ;;  %v5439_v28 = vpack.i.bf16 %v5431_v25, %v5433_v27 }
 0x33e   : > { %4891 = vrot.lane.b32.xlu0 %v5439_v28, %s5125_s23 }
 0x342   : > { %4901 = vrot.lane.b32.xlu0 %v5439_v28, %s5126_s3 }
 0x346   : > { %1106 = vrot.lane.b32.xlu0 %v5433_v27, %s5127_s0 }
 0x34a   : > { %1108 = vrot.lane.b32.xlu0 %v5431_v25, %s5127_s0 }
 0x3b0   : > { %v4892_v29 = vpop.permute.xlu0 %4891 }
 0x3b1   : > { %v4894_v30 = vunpack.i.h.bf16 %v4892_v29  ;;  %v4893_v31 = vunpack.i.l.bf16 %v4892_v29 }
 0x3b3   : > { %v4634_v33 = vpack.c.bf16 %v4894_v30, %v4893_v31 }
 0x3b4   : > { %v4902_v54 = vpop.permute.xlu0 %4901 }
 0x3b5   : > { %4636 = vmatprep.subr.msk.bf16.mxu1 %vm5451_vm5, %v4634_v33  ;;  %v4904_v56 = vunpack.i.h.bf16 %v4902_v54  ;;  %v4903_v57 = vunpack.i.l.bf16 %v4902_v54 }
 0x3b6   : > { %4639 = vmatpush3.bf16.xpose.msk.msra.mxu1 %vm5451_vm5, %v4634_v33 }
 0x3b7   : > { %v4646_v62 = vpack.c.bf16 %v4904_v56, %v4903_v57 }
 0x3b8   : > { %v1107_v4 = vpop.permute.xlu0 %1106 }
 0x3bc   : > { %v1109_v5 = vpop.permute.xlu0 %1108 }
 0x3bd   : > { %4329 = vmatmul.mubr.msk.f32.vlgmr.msra.gmra.mrb[2].mxu1 %vm907_vm4, %v5431_v25 }
 0x490   : > { %v4330_v34 = vpop.f32.mrb[2].mxu1 }
 0x491   : > { %v982_v35 = vpop.f32.mrb[3].mxu1  ;;  %v992_v37 = vmul.f32 0.35355338, %v4330_v34 }
 0x492   : > { %v991_v36 = vmul.f32 0.35355338, %v982_v35 }
 0x493   : > { %v998_v39 = vsel %vm997_vm7, %v992_v37, -inf }
 0x494   : > { %v994_v38 = vsel %vm993_vm6, %v991_v36, -inf }
 0x495   : > { %995 = vmax.xlane.f32.xlu1 %v994_v38 }
 0x499   : > { %999 = vmax.xlane.f32.xlu1 %v998_v39 }
 0x522   : > { %v996_v40 = vpop.xlane.xlu1 %995 }
 0x523   : > { %v1001_v41 = vsub.f32 %v991_v36, %v996_v40 }
 0x525   : > { %v1003_v44 = vmul.f32 1.442695, %v1001_v41 }
 0x526   : > { %v1000_v42 = vpop.xlane.xlu1 %999 }
 0x527   : > { %v1002_v43 = vsub.f32 %v992_v37, %v1000_v42 }
 0x529   : > { %v1005_v45 = vmul.f32 1.442695, %v1002_v43 }
 0x52b   : > { %4974 = vpow2.f32 %v1005_v45 }
 0x52c   : > { %4976 = vpow2.f32 %v1003_v44 }
 0x535   : > { %v4975_v46 = vpop.eup %4974 }
 0x536   : > { %v1010_v47 = vsel %vm997_vm7, %v4975_v46, 0.0  ;;  %v4977_v49 = vpop.eup %4976 }
 0x537   : > { %1011 = vadd.xlane.f32.xlu1 %v1010_v47  ;;  %v1007_v50 = vsel %vm993_vm6, %v4977_v49, 0.0 }
 0x53b   : > { %1008 = vadd.xlane.f32.xlu1 %v1007_v50 }
 0x54c   : > { %4896 = vrot.lane.b32.xlu1 %v5439_v28, %s6025_s25  ;;  %s6059_s25 = sld [smem:[#allocation17_spill]] }
 0x5c4   : > { %v1012_v52 = vpop.xlane.xlu1 %1011 }
 0x5c5   : > { %4978 = vrcp.f32 %v1012_v52 }
 0x5c8   : > { %v1009_v53 = vpop.xlane.xlu1 %1008 }
 0x5c9   : > { %4980 = vrcp.f32 %v1009_v53 }
 0x5cc   : > { %v4897_v55 = vpop.permute.xlu1 %4896 }
 0x5cd   : > { %v4899_v58 = vunpack.i.h.bf16 %v4897_v55  ;;  %v4898_v59 = vunpack.i.l.bf16 %v4897_v55 }
 0x5cf   : > { %v4640_v61 = vpack.c.bf16 %v4899_v58, %v4898_v59  ;;  %v4979_v63 = vpop.eup %4978 }
 0x5d0   : > { %v1016_v2 = vmul.f32 %v4979_v63, %v4975_v46  ;;  %v897_v46 = vld [vmem:[%s5994_s8] sm:$0xff] }
 0x5d1   : > { %4642 = vmatprep.subr.msk.bf16.mxu1 %vm5467_vm10, %v4640_v61 }
 0x5d2   : > { %4645 = vmatpush3.bf16.msk.msra.mxu1 %vm5467_vm10, %v4640_v61 }
 0x5d3   : > { %v4981_v0 = vpop.eup %4980  ;;  %4648 = vmatprep.subr.msk.bf16.mxu1 %vm5451_vm5, %v4646_v62 }
 0x5d4   : > { %v1015_v1 = vmul.f32 %v4981_v0, %v4977_v49 }
 0x5d6   : > { %4335 = vmatprep.mubr.msk.f32.mxu1 %vm993_vm6, %v1015_v1 }
 0x5d7   : > { %4336 = vmatmul.mubr.msk.f32.vlgmr.msra.gmra.mrb[4].mxu1 %vm993_vm6, %v1016_v2 }
 0x5d8   : > { %4342 = vmatprep.mubr.msk.f32.mxu1 %vm907_vm4, %v1107_v4 }
 0x5db   : > { %4651 = vmatpush3.bf16.xpose.msk.msra.mxu1 %vm5451_vm5, %v4646_v62 }
 0x5e2   : > { %4343 = vmatmul.mubr.msk.f32.vlgmr.msra.gmra.mrb[6].mxu1 %vm907_vm4, %v1109_v5 }
 0x6aa   : > { %v5483_v6 = vpop.f32.mrb[4].mxu1 }
 0x6ab   : > { %v5485_v7 = vpop.f32.mrb[5].mxu1 }
 0x6b5   : > { %v4344_v8 = vpop.f32.mrb[6].mxu1 }
 0x6b6   : > { %v1198_v9 = vmul.f32 0.35355338, %v4344_v8  ;;  %v1188_v10 = vpop.f32.mrb[7].mxu1 }
 0x6b7   : > { %v1197_v11 = vmul.f32 0.35355338, %v1188_v10 }
 0x6b8   : > { %v1202_v12 = vsel %vm997_vm7, %v1198_v9, -inf }
 0x6b9   : > { %1203 = vmax.xlane.f32.xlu0 %v1202_v12  ;;  %v1199_v13 = vsel %vm993_vm6, %v1197_v11, -inf }
 0x6ba   : > { %1200 = vmax.xlane.f32.xlu1 %v1199_v13 }
 0x6cb   : > { %4906 = vrot.lane.b32.xlu1 %v5439_v28, %s6024_s1  ;;  %s6057_s1 = smov 48  }
 0x6cf   : > { %1471 = vrot.lane.b32.xlu1 %v5433_v27, %s6022_s24 }
 0x6d3   : > { %1473 = vrot.lane.b32.xlu1 %v5431_v25, %s6022_s24  ;;  %s6054_s24 = smov 72  }
 0x6d7   : > { %4916 = vrot.lane.b32.xlu1 %v5439_v28, %s6021_s29  ;;  %s6055_s29 = smov 104  }
 0x6db   : > { %1759 = vrot.lane.b32.xlu1 %v5431_v25, %s6017_s28 }
 0x746   : > { %v1204_v14 = vpop.xlane.xlu0 %1203 }
 0x747   : > { %v1206_v15 = vsub.f32 %v1198_v9, %v1204_v14  ;;  %v1201_v16 = vpop.xlane.xlu1 %1200 }
 0x748   : > { %v1205_v17 = vsub.f32 %v1197_v11, %v1201_v16 }
 0x749   : > { %v1209_v18 = vmul.f32 1.442695, %v1206_v15 }
 0x74a   : > { %v1207_v19 = vmul.f32 1.442695, %v1205_v17 }
 0x74b   : > { %v4907_v20 = vpop.permute.xlu1 %4906 }
 0x74c   : > { %4982 = vpow2.f32 %v1207_v19  ;;  %v4909_v21 = vunpack.i.h.bf16 %v4907_v20  ;;  %v4908_v22 = vunpack.i.l.bf16 %v4907_v20 }
 0x74d   : > { %4984 = vpow2.f32 %v1209_v18 }
 0x74e   : > { %v4652_v23 = vpack.c.bf16 %v4909_v21, %v4908_v22 }
 0x74f   : > { %v1472_v24 = vpop.permute.xlu1 %1471 }
 0x750   : > { %4654 = vmatprep.subr.msk.bf16.mxu1 %vm5467_vm10, %v4652_v23 }
 0x751   : > { %4657 = vmatpush3.bf16.msk.msra.mxu1 %vm5467_vm10, %v4652_v23 }
 0x753   : > { %v1474_v25 = vpop.permute.xlu1 %1473 }
 0x756   : > { %v4983_v26 = vpop.eup %4982 }
 0x757   : > { %v4917_v29 = vpop.permute.xlu1 %4916  ;;  %v1211_v30 = vsel %vm993_vm6, %v4983_v26, 0.0  ;;  %v4985_v31 = vpop.eup %4984 }
 0x758   : > { %v4919_v33 = vunpack.i.h.bf16 %v4917_v29  ;;  %v4918_v34 = vunpack.i.l.bf16 %v4917_v29  ;;  %1212 = vadd.xlane.f32.xlu0 %v1211_v30  ;;  %v1214_v36 = vsel %vm997_vm7, %v4985_v31, 0.0 }
 0x75a   : > { %v4670_v35 = vpack.c.bf16 %v4919_v33, %v4918_v34 }
 0x75b   : > { %v1760_v43 = vpop.permute.xlu1 %1759 }
 0x75c   : > { %1215 = vadd.xlane.f32.xlu0 %v1214_v36  ;;  %4672 = vmatprep.subr.msk.bf16.mxu0 %vm5451_vm5, %v4670_v35 }
 0x75d   : > { %4675 = vmatpush3.bf16.xpose.msk.msra.mxu0 %vm5451_vm5, %v4670_v35  ;;  %v899_v35 = vld [vmem:[%s5994_s8 + $0x10] sm:$0xff] }
 0x772   : > { %4911 = vrot.lane.b32.xlu0 %v5439_v28, %s6016_s20  ;;  %s6020_s20 = smov 48  }
 0x776   : > { %1757 = vrot.lane.b32.xlu0 %v5433_v27, %s6017_s28  ;;  %v898_v27 = vld [vmem:[%s5994_s8 + $0x8] sm:$0xff]  ;;  %s6019_s28 = smov 40  }
 0x777   : > { %4352 = vmatprep.subr.mxu1 %v898_v27 }
 0x7e5   : > { %v1213_v37 = vpop.xlane.xlu0 %1212 }
 0x7e6   : > { %4986 = vrcp.f32 %v1213_v37 }
 0x7e9   : > { %v1216_v38 = vpop.xlane.xlu0 %1215 }
 0x7ea   : > { %4988 = vrcp.f32 %v1216_v38 }
 0x7ed   : > { %v4912_v39 = vpop.permute.xlu0 %4911 }
 0x7ee   : > { %v4914_v50 = vunpack.i.h.bf16 %v4912_v39  ;;  %v4913_v52 = vunpack.i.l.bf16 %v4912_v39 }
 0x7f0   : > { %v4987_v40 = vpop.eup %4986  ;;  %v4658_v55 = vpack.c.bf16 %v4914_v50, %v4913_v52 }
 0x7f1   : > { %v1758_v41 = vpop.permute.xlu0 %1757  ;;  %v1219_v42 = vmul.f32 %v4987_v40, %v4983_v26 }
 0x7f2   : > { %4385 = vmatprep.mubr.msk.f32.mxu0 %vm907_vm4, %v1758_v41 }
 0x7f3   : > { %4349 = vmatprep.mubr.msk.f32.mxu1 %vm993_vm6, %v1219_v42  ;;  %4386 = vmatmul.mubr.msk.f32.vlgmr.msra.gmra.mrb[4].mxu0 %vm907_vm4, %v1760_v43 }
 0x7f4   : > { %v4989_v44 = vpop.eup %4988 }
 0x7f5   : > { %v1220_v45 = vmul.f32 %v4989_v44, %v4985_v31 }
 0x7f7   : > { %4350 = vmatmul.mubr.msk.f32.vlgmr.msra.gmra.mrb[8].mxu1 %vm993_vm6, %v1220_v45 }
 0x7f8   : > { %4353 = vmatpush3.msra.mxu1 %v898_v27 }
 0x7f9   : > { %4357 = vmatprep.subr.mxu1 %v897_v46 }
 0x8c6   : > { %v4387_v47 = vpop.f32.mrb[4].mxu0 }
 0x8c7   : > { %v1839_v49 = vpop.f32.mrb[5].mxu0  ;;  %v1849_v0 = vmul.f32 0.35355338, %v4387_v47  ;;  %v900_v47 = vld [vmem:[%s5994_s8 + $0x18] sm:$0xff] }
 0x8c8   : > { %v1848_v61 = vmul.f32 0.35355338, %v1839_v49 }
 0x8c9   : > { %v1853_v2 = vsel %vm997_vm7, %v1849_v0, -inf }
 0x8ca   : > { %v4351_v53 = vpop.f32.mrb[8].mxu1  ;;  %v1850_v1 = vsel %vm993_vm6, %v1848_v61, -inf }
 0x8cb   : > { %v1300_v54 = vpop.f32.mrb[9].mxu1 }
 0x8cc   : > { %4354 = vmatprep.mubr.msk.f32.mxu1 %vm907_vm4, %v1300_v54  ;;  %v4064_v54 = vld [vmem:[%s5995_s9] ss:$0 sm:$0xff] }
 0x8cd   : > { %4355 = vmatmul.mubr.msk.f32.vlgmr.msra.gmra.mrb[10].mxu1 %vm907_vm4, %v4351_v53 }
 0x8ce   : > { %4358 = vmatpush3.msra.mxu1 %v897_v46  ;;  %4359 = vmatprep.mubr.msk.f32.mxu1 %vm907_vm4, %v5485_v7 }
 0x8cf   : > { %4660 = vmatprep.subr.msk.bf16.mxu1 %vm5451_vm5, %v4658_v55 }
 0x8d5   : > { %4360 = vmatmul.mubr.msk.f32.vlgmr.msra.gmra.mrb[10].mxu1 %vm907_vm4, %v5483_v6 }
 0x8d6   : > { %4663 = vmatpush3.bf16.xpose.msk.msra.mxu1 %vm5451_vm5, %v4658_v55  ;;  %4366 = vmatprep.mubr.msk.f32.mxu1 %vm907_vm4, %v1472_v24 }
 0x8dd   : > { %4367 = vmatmul.mubr.msk.f32.vlgmr.msra.gmra.mrb[12].mxu1 %vm907_vm4, %v1474_v25 }
 0x9b0   : > { %v4368_v56 = vpop.f32.mrb[12].mxu1 }
 0x9b1   : > { %v1563_v57 = vmul.f32 0.35355338, %v4368_v56  ;;  %v1553_v58 = vpop.f32.mrb[13].mxu1 }
 0x9b2   : > { %v1562_v59 = vmul.f32 0.35355338, %v1553_v58 }
 0x9b3   : > { %v1567_v62 = vsel %vm997_vm7, %v1563_v57, -inf }
 0x9b4   : > { %1568 = vmax.xlane.f32.xlu1 %v1567_v62  ;;  %v1564_v63 = vsel %vm993_vm6, %v1562_v59, -inf }
 0x9b5   : > { %1565 = vmax.xlane.f32.xlu0 %v1564_v63 }
 0x9b8   : > { %1851 = vmax.xlane.f32.xlu1 %v1850_v1 }
 0x9bc   : > { %1854 = vmax.xlane.f32.xlu1 %v1853_v2 }
 0xa41   : > { %v1569_v4 = vpop.xlane.xlu1 %1568 }
 0xa42   : > { %v1571_v5 = vsub.f32 %v1563_v57, %v1569_v4  ;;  %v1566_v6 = vpop.xlane.xlu0 %1565 }
 0xa43   : > { %v1570_v7 = vsub.f32 %v1562_v59, %v1566_v6 }
 0xa44   : > { %v1574_v8 = vmul.f32 1.442695, %v1571_v5 }
 0xa45   : > { %v1572_v9 = vmul.f32 1.442695, %v1570_v7  ;;  %v1852_v10 = vpop.xlane.xlu1 %1851 }
 0xa46   : > { %4990 = vpow2.f32 %v1574_v8  ;;  %v1856_v11 = vsub.f32 %v1848_v61, %v1852_v10  ;;  %v2098_v8 = vld [vmem:[%s5998_s12] sm:$0xff] }
 0xa47   : > { %4992 = vpow2.f32 %v1572_v9  ;;  %v2099_v9 = vld [vmem:[%s5998_s12 + $0x8] sm:$0xff] }
 0xa48   : > { %v1858_v12 = vmul.f32 1.442695, %v1856_v11  ;;  %v4682_v10 = vpack.c.bf16 %v2099_v9, %v2098_v8  ;;  %v2100_v11 = vld [vmem:[%s5998_s12 + $0x10] sm:$0xff] }
 0xa49   : > { %v1855_v13 = vpop.xlane.xlu1 %1854 }
 0xa4a   : > { %4994 = vpow2.f32 %v1858_v12  ;;  %v1857_v14 = vsub.f32 %v1849_v0, %v1855_v13  ;;  %v2101_v12 = vld [vmem:[%s5998_s12 + $0x18] sm:$0xff] }
 0xa4b   : > { %v4686_v13 = vpack.c.bf16 %v2101_v12, %v2100_v11  ;;  %v4070_v11 = vld [vmem:[%s6001_s15] ss:$0 sm:$0xff] }
 0xa4c   : > { %v1860_v15 = vmul.f32 1.442695, %v1857_v14  ;;  %v2200_v14 = vld [vmem:[%s6000_s14] sm:$0xff] }
 0xa4e   : > { %4996 = vpow2.f32 %v1860_v15  ;;  %v2201_v15 = vld [vmem:[%s6000_s14 + $0x8] sm:$0xff] }
 0xa50   : > { %v4991_v16 = vpop.eup %4990 }
 0xa51   : > { %v1579_v17 = vsel %vm997_vm7, %v4991_v16, 0.0  ;;  %v4993_v18 = vpop.eup %4992 }
 0xa52   : > { %1580 = vadd.xlane.f32.xlu0 %v1579_v17  ;;  %v1576_v21 = vsel %vm993_vm6, %v4993_v18, 0.0 }
 0xa54   : > { %v4995_v19 = vpop.eup %4994 }
 0xa55   : > { %v1862_v20 = vsel %vm993_vm6, %v4995_v19, 0.0 }
 0xa56   : > { %1863 = vadd.xlane.f32.xlu1 %v1862_v20  ;;  %1577 = vadd.xlane.f32.xlu0 %v1576_v21 }
 0xa58   : > { %v4997_v22 = vpop.eup %4996 }
 0xa59   : > { %v1865_v23 = vsel %vm997_vm7, %v4997_v22, 0.0 }
 0xa5a   : > { %1866 = vadd.xlane.f32.xlu1 %v1865_v23 }
 0xa6b   : > { %4926 = vrot.lane.b32.xlu1 %v5439_v28, %s6019_s28 }
 0xa6c   : > { %4921 = vrot.lane.b32.xlu0 %v5439_v28, %s6020_s20 }
 0xadf   : > { %v1581_v24 = vpop.xlane.xlu0 %1580 }
 0xae0   : > { %4998 = vrcp.f32 %v1581_v24  ;;  %v4065_v24 = vld [vmem:[%s5996_s10] ss:$0 sm:$0xff] }
 0xae3   : > { %v1864_v25 = vpop.xlane.xlu1 %1863  ;;  %v1578_v26 = vpop.xlane.xlu0 %1577 }
 0xae4   : > { %5000 = vrcp.f32 %v1578_v26  ;;  %v4066_v26 = vld [vmem:[%s5997_s11] ss:$0 sm:$0xff] }
 0xae5   : > { %5002 = vrcp.f32 %v1864_v25 }
 0xae7   : > { %v1867_v29 = vpop.xlane.xlu1 %1866  ;;  %v4922_v30 = vpop.permute.xlu0 %4921 }
 0xae8   : > { %v4924_v31 = vunpack.i.h.bf16 %v4922_v30  ;;  %v4923_v33 = vunpack.i.l.bf16 %v4922_v30  ;;  %5004 = vrcp.f32 %v1867_v29 }
 0xaea   : > { %v4664_v34 = vpack.c.bf16 %v4924_v31, %v4923_v33  ;;  %v4999_v28 = vpop.eup %4998 }
 0xaeb   : > { %v4927_v36 = vpop.permute.xlu1 %4926  ;;  %v1585_v41 = vmul.f32 %v4999_v28, %v4991_v16  ;;  %v4690_v16 = vpack.c.bf16 %v2201_v15, %v2200_v14 }
 0xaec   : > { %4666 = vmatprep.subr.msk.bf16.mxu1 %vm5467_vm10, %v4664_v34  ;;  %v4929_v38 = vunpack.i.h.bf16 %v4927_v36  ;;  %v4928_v39 = vunpack.i.l.bf16 %v4927_v36 }
 0xaed   : > { %4669 = vmatpush3.bf16.msk.msra.mxu1 %vm5467_vm10, %v4664_v34  ;;  %v2202_v34 = vld [vmem:[%s6000_s14 + $0x10] sm:$0xff] }
 0xaee   : > { %4376 = vmatprep.subr.mxu1 %v899_v35  ;;  %v5001_v37 = vpop.eup %5000  ;;  %v4676_v42 = vpack.c.bf16 %v4929_v38, %v4928_v39  ;;  %v2204_v38 = vld [vmem:[%s6000_s14 + $0x20] sm:$0xff]  ;;  %v2205_v39 = vld [vmem:[%s6000_s14 + $0x28] sm:$0xff] }
 0xaef   : > { %v1584_v40 = vmul.f32 %v5001_v37, %v4993_v18  ;;  %v5003_v43 = vpop.eup %5002 }
 0xaf0   : > { %v1870_v46 = vmul.f32 %v5003_v43, %v4995_v19 }
 0xaf1   : > { %4373 = vmatprep.mubr.msk.f32.mxu1 %vm993_vm6, %v1584_v40  ;;  %v4698_v40 = vpack.c.bf16 %v2205_v39, %v2204_v38 }
 0xaf2   : > { %4374 = vmatmul.mubr.msk.f32.vlgmr.msra.gmra.mrb[14].mxu1 %vm993_vm6, %v1585_v41  ;;  %v5005_v27 = vpop.eup %5004  ;;  %v2206_v41 = vld [vmem:[%s6000_s14 + $0x30] sm:$0xff] }
 0xaf3   : > { %4377 = vmatpush3.msra.mxu1 %v899_v35  ;;  %v1871_v49 = vmul.f32 %v5005_v27, %v4997_v22  ;;  %v2203_v35 = vld [vmem:[%s6000_s14 + $0x18] sm:$0xff] }
 0xaf4   : > { %4678 = vmatprep.subr.msk.bf16.mxu1 %vm5467_vm10, %v4676_v42  ;;  %v4694_v37 = vpack.c.bf16 %v2203_v35, %v2202_v34  ;;  %v4078_v34 = vld [vmem:[%s5992_s6 + $0x38] sm:$0xff] }
 0xbc5   : > { %v4375_v44 = vpop.f32.mrb[14].mxu1 }
 0xbc6   : > { %v1665_v45 = vpop.f32.mrb[15].mxu1 }
 0xbc7   : > { %4378 = vmatprep.mubr.msk.f32.mxu1 %vm907_vm4, %v1665_v45  ;;  %v2209_v45 = vld [vmem:[%s6000_s14 + $0x48] sm:$0xff] }
 0xbc8   : > { %4379 = vmatmul.mubr.msk.f32.vlgmr.msra.gmra.mrb[10].mxu1 %vm907_vm4, %v4375_v44  ;;  %v2208_v44 = vld [vmem:[%s6000_s14 + $0x40] sm:$0xff] }
 0xbc9   : > { %4681 = vmatpush3.bf16.msk.msra.mxu1 %vm5467_vm10, %v4676_v42  ;;  %4392 = vmatprep.mubr.msk.f32.mxu1 %vm993_vm6, %v1870_v46  ;;  %v2207_v42 = vld [vmem:[%s6000_s14 + $0x38] sm:$0xff]  ;;  %v4706_v27 = vpack.c.bf16 %v2209_v45, %v2208_v44  ;;  %v2210_v46 = vld [vmem:[%s6000_s14 + $0x50] sm:$0xff]  ;;  %v4074_v44 = vld [vmem:[%s6046_s5 + $0x1] ss:$0 sm:$0xff] }
 0xbca   : > { %4395 = vmatprep.subr.mxu1 %v900_v47  ;;  %v4702_v43 = vpack.c.bf16 %v2207_v42, %v2206_v41  ;;  %v4073_v42 = vld [vmem:[%s6045_s30 + $0x1] ss:$0 sm:$0xff] }
 0xbcc   : > { %4393 = vmatmul.mubr.msk.f32.vlgmr.msra.gmra.mrb[16].mxu1 %vm993_vm6, %v1871_v49 }
 0xbcd   : > { %4396 = vmatpush3.msra.mxu1 %v900_v47  ;;  %v2211_v47 = vld [vmem:[%s6000_s14 + $0x58] sm:$0xff] }
 0xbce   : > { %4683 = vmatprep.subr.bf16.mxu1 %v4682_v10  ;;  %v4710_v49 = vpack.c.bf16 %v2211_v47, %v2210_v46 }
 0xc9f   : > { %v4394_v50 = vpop.f32.mrb[16].mxu1 }
 0xca0   : > { %v1951_v52 = vpop.f32.mrb[17].mxu1 }
 0xca1   : > { %4397 = vmatprep.mubr.msk.f32.mxu1 %vm907_vm4, %v1951_v52  ;;  %v2213_v52 = vld [vmem:[%s6000_s14 + $0x68] sm:$0xff] }
 0xca2   : > { %4398 = vmatmul.mubr.msk.f32.vlgmr.msra.gmra.mrb[10].mxu1 %vm907_vm4, %v4394_v50  ;;  %v2212_v50 = vld [vmem:[%s6000_s14 + $0x60] sm:$0xff] }
 0xca3   : > { %4685 = vmatpush3.bf16.msra.mxu1 %v4682_v10 }
 0xca4   : > { %4687 = vmatprep.subr.bf16.mxu1 %v4686_v13 }
 0xca7   : > { %4689 = vmatpush3.bf16.msra.mxu1 %v4686_v13 }
 0xca8   : > { %4691 = vmatprep.subr.bf16.mxu1 %v4690_v16 }
 0xd75   : > { %v4399_v53 = vpop.f32.mrb[10].mxu1 }
 0xd76   : > { %v2044_v55 = vadd.f32 %v4399_v53, %v5400_v51  ;;  %v2032_v56 = vpop.f32.mrb[11].mxu1  ;;  %v4714_v53 = vpack.c.bf16 %v2213_v52, %v2212_v50  ;;  %v4080_v52 = vld [vmem:[%s5993_s7 + $0x1] ss:$0 sm:$0xff] }
 0xd77   : > { %v2043_v57 = vadd.f32 %v2032_v56, %v5396_v48 }
 0xd78   : > { %v5574_v58 = vadd.f32 %v4064_v54, %v2044_v55  ;;  %v2215_v55 = vld [vmem:[%s6000_s14 + $0x78] sm:$0xff] }
 0xd79   : > { %v5576_v59 = vadd.f32 %v4064_v54, %v2043_v57  ;;  %v2214_v54 = vld [vmem:[%s6000_s14 + $0x70] sm:$0xff]  ;;  %v4067_v57 = vld [vmem:[%s5999_s13] ss:$0 sm:$0xff] }
 0xd7a   : > { %v2059_v61 = vsel %vm764_vm3, %v5574_v58, 0.0  ;;  %v4718_v56 = vpack.c.bf16 %v2215_v55, %v2214_v54 }
 0xd7b   : > { %2060 = vadd.xlane.f32.xlu1 %v2059_v61  ;;  %v2056_v62 = vsel %vm760_vm2, %v5576_v59, 0.0 }
 0xd7c   : > { %2057 = vadd.xlane.f32.xlu0 %v2056_v62 }
 0xe08   : > { %v2061_v63 = vpop.xlane.xlu1 %2060 }
 0xe09   : > { %v2063_v0 = vmul.f32 0.03125, %v2061_v63  ;;  %v2058_v1 = vpop.xlane.xlu0 %2057 }
 0xe0a   : > { %v2062_v2 = vmul.f32 0.03125, %v2058_v1 }
 0xe0b   : > { %v2065_v51 = vsub.f32 %v5574_v58, %v2063_v0 }
 0xe0c   : > { %v2064_v48 = vsub.f32 %v5576_v59, %v2062_v2 }
 0xe0d   : > { %v2067_v6 = vmul.f32 %v2065_v51, %v2065_v51 }
 0xe0e   : > { %v2066_v4 = vmul.f32 %v2064_v48, %v2064_v48 }
 0xe0f   : > { %v2071_v7 = vsel %vm764_vm3, %v2067_v6, 0.0 }
 0xe10   : > { %v2068_v5 = vsel %vm760_vm2, %v2066_v4, 0.0 }
 0xe11   : > { %2069 = vadd.xlane.f32.xlu0 %v2068_v5 }
 0xe15   : > { %2072 = vadd.xlane.f32.xlu0 %v2071_v7 }
 0xe9e   : > { %v2070_v17 = vpop.xlane.xlu0 %2069 }
 0xe9f   : > { %v2074_v18 = vmul.f32 0.03125, %v2070_v17 }
 0xea1   : > { %v2076_v19 = vadd.f32 1e-05, %v2074_v18 }
 0xea2   : > { %v2073_v20 = vpop.xlane.xlu0 %2072 }
 0xea3   : > { %5006 = vrsqrt.f32 %v2076_v19  ;;  %v2075_v21 = vmul.f32 0.03125, %v2073_v20 }
 0xea5   : > { %v2077_v22 = vadd.f32 1e-05, %v2075_v21 }
 0xea7   : > { %5008 = vrsqrt.f32 %v2077_v22 }
 0xead   : > { %v5007_v23 = vpop.eup %5006 }
 0xeae   : > { %v2080_v25 = vmul.f32 %v5007_v23, %v2064_v48 }
 0xeb0   : > { %v2088_v29 = vmul.f32 %v4065_v24, %v2080_v25 }
 0xeb1   : > { %v5009_v30 = vpop.eup %5008 }
 0xeb2   : > { %v2081_v31 = vmul.f32 %v5009_v30, %v2065_v51  ;;  %v2096_v33 = vadd.f32 %v4066_v26, %v2088_v29  ;;  %v4075_v29 = vld [vmem:[%s5992_s6 + $0x20] sm:$0xff]  ;;  %v4076_v30 = vld [vmem:[%s5992_s6 + $0x28] sm:$0xff] }
 0xeb4   : > { %v2089_v36 = vmul.f32 %v4065_v24, %v2081_v31  ;;  %4408 = vmatprep.mubr.msk.f32.mxu1 %vm760_vm2, %v2096_v33  ;;  %v4722_v31 = vpack.c.bf16 %v4076_v30, %v4075_v29  ;;  %v4077_v33 = vld [vmem:[%s5992_s6 + $0x30] sm:$0xff] }
 0xeb5   : > { %v4726_v35 = vpack.c.bf16 %v4078_v34, %v4077_v33 }
 0xeb6   : > { %v2097_v28 = vadd.f32 %v4066_v26, %v2089_v36  ;;  %4723 = vmatprep.subr.bf16.mxu0 %v4722_v31 }
 0xeb7   : > { %4725 = vmatpush3.bf16.msra.mxu0 %v4722_v31 }
 0xeb8   : > { %4409 = vmatmul.mubr.msk.f32.vlgmr.msra.gmra.mrb[18].mxu1 %vm760_vm2, %v2097_v28  ;;  %4727 = vmatprep.subr.bf16.mxu0 %v4726_v35 }
 0xeb9   : > { %4693 = vmatpush3.bf16.msra.mxu1 %v4690_v16 }
 0xeba   : > { %4695 = vmatprep.subr.bf16.mxu1 %v4694_v37 }
 0xebb   : > { %4729 = vmatpush3.bf16.msra.mxu0 %v4726_v35 }
 0xebd   : > { %4697 = vmatpush3.bf16.msra.mxu1 %v4694_v37 }
 0xebe   : > { %4699 = vmatprep.subr.bf16.mxu1 %v4698_v40 }
 0xec1   : > { %4701 = vmatpush3.bf16.msra.mxu1 %v4698_v40 }
 0xec2   : > { %4703 = vmatprep.subr.bf16.mxu1 %v4702_v43 }
 0xec5   : > { %4705 = vmatpush3.bf16.msra.mxu1 %v4702_v43 }
 0xec6   : > { %4707 = vmatprep.subr.bf16.mxu1 %v4706_v27 }
 0xec9   : > { %4709 = vmatpush3.bf16.msra.mxu1 %v4706_v27 }
 0xeca   : > { %4711 = vmatprep.subr.bf16.mxu1 %v4710_v49 }
 0xecd   : > { %4713 = vmatpush3.bf16.msra.mxu1 %v4710_v49 }
 0xece   : > { %4715 = vmatprep.subr.bf16.mxu1 %v4714_v53 }
 0xed1   : > { %4717 = vmatpush3.bf16.msra.mxu1 %v4714_v53 }
 0xed2   : > { %4719 = vmatprep.subr.bf16.mxu1 %v4718_v56 }
 0xed5   : > { %4721 = vmatpush3.bf16.msra.mxu1 %v4718_v56 }
 0xf8b   : > { %v4410_v61 = vpop.f32.mrb[18].mxu1 }
 0xf8c   : > { %v2187_v62 = vadd.f32 %v4410_v61, %v4067_v57  ;;  %v2181_v63 = vpop.f32.mrb[19].mxu1 }
 0xf8d   : > { %v2182_v0 = vadd.f32 %v4067_v57, %v2181_v63 }
 0xf8e   : > { %v2193_v1 = vmul.f32 0.70710677, %v2187_v62  ;;  %v2191_v7 = vmul.f32 0.5, %v2187_v62 }
 0xf8f   : > { %v2192_v2 = vmul.f32 0.70710677, %v2182_v0  ;;  %v2190_v5 = vmul.f32 0.5, %v2182_v0 }
 0xf90   : > { %5010 = verf.f32 %v2193_v1 }
 0xf91   : > { %5012 = verf.f32 %v2192_v2 }
 0xf9a   : > { %v5011_v51 = vpop.eup %5010 }
 0xf9b   : > { %v5013_v48 = vpop.eup %5012  ;;  %v2197_v4 = vadd.f32 1.0, %v5011_v51 }
 0xf9c   : > { %v2196_v6 = vadd.f32 1.0, %v5013_v48 }
 0xf9d   : > { %v2199_v9 = vmul.f32 %v2197_v4, %v2191_v7 }
 0xf9e   : > { %v2198_v8 = vmul.f32 %v2196_v6, %v2190_v5 }
 0xfa0   : > { %4443 = vmatprep.mubr.f32.mxu1 %v2198_v8 }
 0xfa1   : > { %4444 = vmatmul.mubr.f32.vlgmr.msra.gmra.mrb[20].mxu1 %v2199_v9 }
0x1074   : > { %v4445_v10 = vpop.f32.mrb[20].mxu1 }
0x1075   : > { %v2282_v12 = vpop.f32.mrb[21].mxu1  ;;  %v2292_v13 = vadd.f32 %v4445_v10, %v5574_v58 }
0x1076   : > { %v2291_v14 = vadd.f32 %v2282_v12, %v5576_v59 }
0x1077   : > { %v5664_v16 = vadd.f32 %v4070_v11, %v2292_v13 }
0x1078   : > { %v5662_v15 = vadd.f32 %v4070_v11, %v2291_v14 }
0x1079   : > { %v2309_v18 = vsel %vm764_vm3, %v5664_v16, 0.0 }
0x107a   : > { %v2306_v17 = vsel %vm760_vm2, %v5662_v15, 0.0 }
0x107b   : > { %2307 = vadd.xlane.f32.xlu0 %v2306_v17 }
0x107f   : > { %2310 = vadd.xlane.f32.xlu0 %v2309_v18 }
0x1108   : > { %v2308_v19 = vpop.xlane.xlu0 %2307 }
0x1109   : > { %v2312_v20 = vmul.f32 0.03125, %v2308_v19 }
0x110b   : > { %v2314_v21 = vsub.f32 %v5662_v15, %v2312_v20 }
0x110c   : > { %v2311_v22 = vpop.xlane.xlu0 %2310 }
0x110d   : > { %v2313_v58 = vmul.f32 0.03125, %v2311_v22  ;;  %v2316_v23 = vmul.f32 %v2314_v21, %v2314_v21 }
0x110f   : > { %v2315_v59 = vsub.f32 %v5664_v16, %v2313_v58  ;;  %v2318_v24 = vsel %vm760_vm2, %v2316_v23, 0.0 }
0x1110   : > { %2319 = vadd.xlane.f32.xlu0 %v2318_v24 }
0x1111   : > { %v2317_v25 = vmul.f32 %v2315_v59, %v2315_v59 }
0x1113   : > { %v2321_v26 = vsel %vm764_vm3, %v2317_v25, 0.0 }
0x1114   : > { %2322 = vadd.xlane.f32.xlu1 %v2321_v26 }
0x119d   : > { %v2320_v36 = vpop.xlane.xlu0 %2319 }
0x119e   : > { %v2324_v28 = vmul.f32 0.03125, %v2320_v36 }
0x11a0   : > { %v2326_v37 = vadd.f32 1e-05, %v2324_v28 }
0x11a1   : > { %v2323_v38 = vpop.xlane.xlu1 %2322 }
0x11a2   : > { %5014 = vrsqrt.f32 %v2326_v37  ;;  %v2325_v39 = vmul.f32 0.03125, %v2323_v38 }
0x11a4   : > { %v2327_v40 = vadd.f32 1e-05, %v2325_v39 }
0x11a6   : > { %5016 = vrsqrt.f32 %v2327_v40 }
0x11ac   : > { %v5015_v41 = vpop.eup %5014 }
0x11ad   : > { %v2330_v43 = vmul.f32 %v5015_v41, %v2314_v21 }
0x11af   : > { %v2338_v45 = vmul.f32 %v4073_v42, %v2330_v43 }
0x11b0   : > { %v5017_v27 = vpop.eup %5016 }
0x11b1   : > { %v2331_v46 = vmul.f32 %v5017_v27, %v2315_v59  ;;  %v2346_v47 = vadd.f32 %v4074_v44, %v2338_v45 }
0x11b3   : > { %v2339_v49 = vmul.f32 %v4073_v42, %v2331_v46  ;;  %4454 = vmatprep.mubr.msk.f32.mxu0 %vm760_vm2, %v2346_v47 }
0x11b5   : > { %v2347_v50 = vadd.f32 %v4074_v44, %v2339_v49 }
0x11b7   : > { %4455 = vmatmul.mubr.msk.f32.vlgmr.msra.gmra.mrb[6].mxu0 %vm760_vm2, %v2347_v50 }
0x128a   : > { %v4456_v53 = vpop.f32.mrb[6].mxu0 }
0x128b   : > { %v5697_v54 = vadd.f32 %v4456_v53, %v4080_v52  ;;  %v2433_v55 = vpop.f32.mrb[7].mxu0 }
0x128c   : > { %v5699_v56 = vadd.f32 %v4080_v52, %v2433_v55 }
0x128e   : > { %4461 = vmatprep.mubr.msk.f32.mxu0 %vm907_vm4, %v5699_v56  ;;  %v5705_v57 = vpack.i.bf16 %v5697_v54, %v5699_v56 }
0x1290   : > { %4931 = vrot.lane.b32.xlu0 %v5705_v57, %s5125_s23  ;;  %s6051_s23 = smov 64  }
0x1294   : > { %4941 = vrot.lane.b32.xlu0 %v5705_v57, %s5126_s3  ;;  %s6052_s3 = smov 56  }
0x1298   : > { %2648 = vrot.lane.b32.xlu0 %v5699_v56, %s5127_s0 }
0x129c   : > { %2650 = vrot.lane.b32.xlu0 %v5697_v54, %s5127_s0  ;;  %s6053_s0 = smov 112  }
0x1302   : > { %v4932_v61 = vpop.permute.xlu0 %4931 }
0x1303   : > { %v4934_v62 = vunpack.i.h.bf16 %v4932_v61  ;;  %v4933_v63 = vunpack.i.l.bf16 %v4932_v61 }
0x1305   : > { %v4730_v0 = vpack.c.bf16 %v4934_v62, %v4933_v63 }
0x1306   : > { %v4942_v20 = vpop.permute.xlu0 %4941 }
0x1307   : > { %4732 = vmatprep.subr.msk.bf16.mxu0 %vm5451_vm5, %v4730_v0  ;;  %v4944_v22 = vunpack.i.h.bf16 %v4942_v20  ;;  %v4943_v58 = vunpack.i.l.bf16 %v4942_v20 }
0x1308   : > { %4735 = vmatpush3.bf16.xpose.msk.msra.mxu0 %vm5451_vm5, %v4730_v0 }
0x1309   : > { %v4742_v25 = vpack.c.bf16 %v4944_v22, %v4943_v58 }
0x130a   : > { %v2649_v33 = vpop.permute.xlu0 %2648 }
0x130e   : > { %v2651_v34 = vpop.permute.xlu0 %2650 }
0x130f   : > { %4462 = vmatmul.mubr.msk.f32.vlgmr.msra.gmra.mrb[8].mxu0 %vm907_vm4, %v5697_v54 }
0x13e2   : > { %v4463_v1 = vpop.f32.mrb[8].mxu0 }
0x13e3   : > { %v2527_v2 = vpop.f32.mrb[9].mxu0  ;;  %v2537_v48 = vmul.f32 0.35355338, %v4463_v1 }
0x13e4   : > { %v2536_v51 = vmul.f32 0.35355338, %v2527_v2 }
0x13e5   : > { %v2541_v5 = vsel %vm997_vm7, %v2537_v48, -inf }
0x13e6   : > { %v2538_v4 = vsel %vm993_vm6, %v2536_v51, -inf }
0x13e7   : > { %2539 = vmax.xlane.f32.xlu1 %v2538_v4 }
0x13eb   : > { %2542 = vmax.xlane.f32.xlu1 %v2541_v5 }
0x1474   : > { %v2540_v6 = vpop.xlane.xlu1 %2539 }
0x1475   : > { %v2544_v7 = vsub.f32 %v2536_v51, %v2540_v6 }
0x1477   : > { %v2546_v10 = vmul.f32 1.442695, %v2544_v7 }
0x1478   : > { %v2543_v8 = vpop.xlane.xlu1 %2542 }
0x1479   : > { %v2545_v9 = vsub.f32 %v2537_v48, %v2543_v8 }
0x147b   : > { %v2548_v11 = vmul.f32 1.442695, %v2545_v9 }
0x147d   : > { %5018 = vpow2.f32 %v2548_v11 }
0x147e   : > { %5020 = vpow2.f32 %v2546_v10 }
0x1487   : > { %v5019_v12 = vpop.eup %5018 }
0x1488   : > { %v2553_v13 = vsel %vm997_vm7, %v5019_v12, 0.0  ;;  %v5021_v14 = vpop.eup %5020 }
0x1489   : > { %2554 = vadd.xlane.f32.xlu1 %v2553_v13  ;;  %v2550_v17 = vsel %vm993_vm6, %v5021_v14, 0.0 }
0x148d   : > { %2551 = vadd.xlane.f32.xlu1 %v2550_v17  ;;  %v4083_v17 = vld [vmem:[%s5994_s8 + $0x20] sm:$0xff] }
0x149e   : > { %4936 = vrot.lane.b32.xlu1 %v5705_v57, %s6051_s23  ;;  %s6058_s23 = smov 40  }
0x1516   : > { %v2555_v18 = vpop.xlane.xlu1 %2554 }
0x1517   : > { %5022 = vrcp.f32 %v2555_v18 }
0x151a   : > { %v2552_v19 = vpop.xlane.xlu1 %2551 }
0x151b   : > { %5024 = vrcp.f32 %v2552_v19 }
0x151e   : > { %v4937_v21 = vpop.permute.xlu1 %4936 }
0x151f   : > { %v4939_v23 = vunpack.i.h.bf16 %v4937_v21  ;;  %v4938_v59 = vunpack.i.l.bf16 %v4937_v21 }
0x1521   : > { %v4736_v24 = vpack.c.bf16 %v4939_v23, %v4938_v59  ;;  %v5023_v26 = vpop.eup %5022 }
0x1522   : > { %v2559_v31 = vmul.f32 %v5023_v26, %v5019_v12 }
0x1523   : > { %4738 = vmatprep.subr.msk.bf16.mxu0 %vm5467_vm10, %v4736_v24 }
0x1524   : > { %4741 = vmatpush3.bf16.msk.msra.mxu0 %vm5467_vm10, %v4736_v24 }
0x1525   : > { %v5025_v29 = vpop.eup %5024  ;;  %4744 = vmatprep.subr.msk.bf16.mxu0 %vm5451_vm5, %v4742_v25 }
0x1526   : > { %v2558_v30 = vmul.f32 %v5025_v29, %v5021_v14  ;;  %v4084_v14 = vld [vmem:[%s5994_s8 + $0x28] sm:$0xff] }
0x1528   : > { %4468 = vmatprep.mubr.msk.f32.mxu0 %vm993_vm6, %v2558_v30 }
0x1529   : > { %4469 = vmatmul.mubr.msk.f32.vlgmr.msra.gmra.mrb[10].mxu0 %vm993_vm6, %v2559_v31 }
0x152a   : > { %4475 = vmatprep.mubr.msk.f32.mxu0 %vm907_vm4, %v2649_v33 }
0x152d   : > { %4747 = vmatpush3.bf16.xpose.msk.msra.mxu0 %vm5451_vm5, %v4742_v25 }
0x152e   : > { %4485 = vmatprep.subr.mxu0 %v4084_v14 }
0x1534   : > { %4476 = vmatmul.mubr.msk.f32.vlgmr.msra.gmra.mrb[12].mxu0 %vm907_vm4, %v2651_v34 }
0x1535   : > { %4486 = vmatpush3.msra.mxu0 %v4084_v14 }
0x1536   : > { %4490 = vmatprep.subr.mxu0 %v4083_v17 }
0x15fc   : > { %v5739_v35 = vpop.f32.mrb[10].mxu0 }
0x15fd   : > { %v5741_v36 = vpop.f32.mrb[11].mxu0 }
0x1607   : > { %v4477_v28 = vpop.f32.mrb[12].mxu0 }
0x1608   : > { %v2740_v37 = vmul.f32 0.35355338, %v4477_v28  ;;  %v2730_v38 = vpop.f32.mrb[13].mxu0 }
0x1609   : > { %v2739_v39 = vmul.f32 0.35355338, %v2730_v38 }
0x160a   : > { %v2744_v40 = vsel %vm997_vm7, %v2740_v37, -inf }
0x160b   : > { %2745 = vmax.xlane.f32.xlu0 %v2744_v40  ;;  %v2741_v41 = vsel %vm993_vm6, %v2739_v39, -inf }
0x160c   : > { %2742 = vmax.xlane.f32.xlu1 %v2741_v41 }
0x161d   : > { %4946 = vrot.lane.b32.xlu1 %v5705_v57, %s6052_s3  ;;  %s620_s3 = sand.u32 1, %s5114_s22  }
0x1621   : > { %3013 = vrot.lane.b32.xlu1 %v5699_v56, %s6053_s0 }
0x1625   : > { %3015 = vrot.lane.b32.xlu1 %v5697_v54, %s6053_s0 }
0x1629   : > { %4956 = vrot.lane.b32.xlu1 %v5705_v57, %s6054_s24 }
0x162d   : > { %3301 = vrot.lane.b32.xlu1 %v5697_v54, %s6055_s29 }
0x1698   : > { %v2746_v42 = vpop.xlane.xlu0 %2745 }
0x1699   : > { %v2748_v43 = vsub.f32 %v2740_v37, %v2746_v42  ;;  %v2743_v44 = vpop.xlane.xlu1 %2742 }
0x169a   : > { %v2747_v45 = vsub.f32 %v2739_v39, %v2743_v44 }
0x169b   : > { %v2751_v27 = vmul.f32 1.442695, %v2748_v43 }
0x169c   : > { %v2749_v46 = vmul.f32 1.442695, %v2747_v45 }
0x169d   : > { %5026 = vpow2.f32 %v2751_v27  ;;  %v4947_v47 = vpop.permute.xlu1 %4946 }
0x169e   : > { %v4949_v49 = vunpack.i.h.bf16 %v4947_v47  ;;  %v4948_v50 = vunpack.i.l.bf16 %v4947_v47  ;;  %5028 = vpow2.f32 %v2749_v46 }
0x16a0   : > { %v4748_v52 = vpack.c.bf16 %v4949_v49, %v4948_v50 }
0x16a1   : > { %v3014_v62 = vpop.permute.xlu1 %3013 }
0x16a2   : > { %4750 = vmatprep.subr.msk.bf16.mxu1 %vm5467_vm10, %v4748_v52 }
0x16a3   : > { %4753 = vmatpush3.bf16.msk.msra.mxu1 %vm5467_vm10, %v4748_v52 }
0x16a5   : > { %v3016_v1 = vpop.permute.xlu1 %3015 }
0x16a7   : > { %v5027_v53 = vpop.eup %5026 }
0x16a8   : > { %v2756_v54 = vsel %vm997_vm7, %v5027_v53, 0.0  ;;  %v5029_v55 = vpop.eup %5028 }
0x16a9   : > { %2757 = vadd.xlane.f32.xlu0 %v2756_v54  ;;  %v2753_v61 = vsel %vm993_vm6, %v5029_v55, 0.0  ;;  %v4957_v5 = vpop.permute.xlu1 %4956 }
0x16aa   : > { %v4959_v8 = vunpack.i.h.bf16 %v4957_v5  ;;  %v4958_v9 = vunpack.i.l.bf16 %v4957_v5 }
0x16ac   : > { %v4766_v11 = vpack.c.bf16 %v4959_v8, %v4958_v9 }
0x16ad   : > { %2754 = vadd.xlane.f32.xlu0 %v2753_v61  ;;  %v3302_v13 = vpop.permute.xlu1 %3301 }
0x16c3   : > { %4951 = vrot.lane.b32.xlu0 %v5705_v57, %s6056_s26  ;;  %s621_s26 = scalar_lea.vmem [#allocation2], %s620_s3 }
0x16c4   : > { %s3958_s27 = sshll.u32 %s621_s26, 4  ;;  %s5946_s27 = int_to_ptr.vmem [resolvable:$true] %s3958_s27 }
0x16c5   : > { %s5060_s0 = scalar_lea.vmem %s5946_s27, 16 }
0x16c6   : > { %p5061_p11 = scmp.ne.s32.totalorder %s5946_s27, %s5060_s0 }
0x16c7   : > { %3299 = vrot.lane.b32.xlu0 %v5699_v56, %s6055_s29  ;;  %s4156_s29 = sshll.u32 %s5266_s2, 4  ;;  %s5139_s2 = smov [#allocation2]  }
0x16c8   : > { %p5062_p12 = pnand %p5061_p11, %p5283_p5  ;;  %s5064_s24 = sshll.u32 %s5139_s2, 4  ;;  %s5065_s24 = int_to_ptr.vmem [resolvable:$false] %s5064_s24 }
0x16c9   : > { %s5066_s5 = scalar_lea.vmem %s5065_s24, 32  ;;  %p5067_p0 = scmp.lt.s32.totalorder %s5946_s27, %s5065_s24 }
0x16ca   : > { %p5063_p13 = pneg %p5062_p12  ;;  %p5068_p1 = scmp.lt.s32.totalorder %s5066_s5, %s5060_s0 }
0x16cc   : > { %p5069_p2 = por %p5068_p1, %p5067_p0 }
0x16ce   : > { %p5070_p3 = pnand %p5069_p2, %p5063_p13 }
0x1736   : > { %v2758_v63 = vpop.xlane.xlu0 %2757 }
0x1737   : > { %5030 = vrcp.f32 %v2758_v63  ;;  %v4085_v63 = vld [vmem:[%s5994_s8 + $0x30] sm:$0xff] }
0x173a   : > { %v2755_v0 = vpop.xlane.xlu0 %2754 }
0x173b   : > { %5032 = vrcp.f32 %v2755_v0 }
0x173e   : > { %v4952_v2 = vpop.permute.xlu0 %4951 }
0x173f   : > { %v4954_v51 = vunpack.i.h.bf16 %v4952_v2  ;;  %v4953_v48 = vunpack.i.l.bf16 %v4952_v2 }
0x1741   : > { %v4754_v4 = vpack.c.bf16 %v4954_v51, %v4953_v48  ;;  %v5031_v6 = vpop.eup %5030 }
0x1742   : > { %v2762_v56 = vmul.f32 %v5031_v6, %v5027_v53  ;;  %v3300_v12 = vpop.permute.xlu0 %3299 }
0x1743   : > { %4756 = vmatprep.subr.msk.bf16.mxu1 %vm5451_vm5, %v4754_v4 }
0x1745   : > { %v5033_v7 = vpop.eup %5032 }
0x1746   : > { %v2761_v10 = vmul.f32 %v5033_v7, %v5029_v55 }
0x1748   : > { %4482 = vmatprep.mubr.msk.f32.mxu1 %vm993_vm6, %v2761_v10 }
0x1749   : > { %4483 = vmatmul.mubr.msk.f32.vlgmr.msra.gmra.mrb[22].mxu1 %vm993_vm6, %v2762_v56 }
0x174a   : > { %4759 = vmatpush3.bf16.xpose.msk.msra.mxu1 %vm5451_vm5, %v4754_v4  ;;  %4499 = vmatprep.mubr.msk.f32.mxu1 %vm907_vm4, %v3014_v62 }
0x174b   : > { %4768 = vmatprep.subr.msk.bf16.mxu1 %vm5451_vm5, %v4766_v11 }
0x1751   : > { %4500 = vmatmul.mubr.msk.f32.vlgmr.msra.gmra.mrb[24].mxu1 %vm907_vm4, %v3016_v1 }
0x1752   : > { %4771 = vmatpush3.bf16.xpose.msk.msra.mxu1 %vm5451_vm5, %v4766_v11  ;;  %4518 = vmatprep.mubr.msk.f32.mxu1 %vm907_vm4, %v3300_v12  ;;  %v4086_v12 = vld [vmem:[%s5994_s8 + $0x38] sm:$0xff] }
0x1759   : > { %4519 = vmatmul.mubr.msk.f32.vlgmr.msra.gmra.mrb[26].mxu1 %vm907_vm4, %v3302_v13 }
0x181c   : > { %v4484_v18 = vpop.f32.mrb[22].mxu1 }
0x181d   : > { %v2842_v19 = vpop.f32.mrb[23].mxu1 }
0x181e   : > { %4487 = vmatprep.mubr.msk.f32.mxu0 %vm907_vm4, %v2842_v19  ;;  %v4124_v19 = vld [vmem:[%s5995_s9 + $0x1] ss:$0 sm:$0xff] }
0x181f   : > { %4488 = vmatmul.mubr.msk.f32.vlgmr.msra.gmra.mrb[14].mxu0 %vm907_vm4, %v4484_v18 }
0x1820   : > { %4492 = vmatprep.mubr.msk.f32.mxu0 %vm907_vm4, %v5741_v36  ;;  %4491 = vmatpush3.msra.mxu0 %v4083_v17 }
0x1824   : > { %v4501_v32 = vpop.f32.mrb[24].mxu1 }
0x1825   : > { %v3105_v20 = vmul.f32 0.35355338, %v4501_v32  ;;  %v3095_v21 = vpop.f32.mrb[25].mxu1 }
0x1826   : > { %v3104_v22 = vmul.f32 0.35355338, %v3095_v21 }
0x1827   : > { %v3109_v58 = vsel %vm997_vm7, %v3105_v20, -inf  ;;  %4493 = vmatmul.mubr.msk.f32.vlgmr.msra.gmra.mrb[14].mxu0 %vm907_vm4, %v5739_v35 }
0x1828   : > { %3110 = vmax.xlane.f32.xlu1 %v3109_v58  ;;  %v3106_v23 = vsel %vm993_vm6, %v3104_v22, -inf }
0x1829   : > { %3107 = vmax.xlane.f32.xlu0 %v3106_v23 }
0x182c   : > { %v4520_v59 = vpop.f32.mrb[26].mxu1 }
0x182d   : > { %v3381_v24 = vpop.f32.mrb[27].mxu1  ;;  %v3391_v26 = vmul.f32 0.35355338, %v4520_v59 }
0x182e   : > { %v3390_v25 = vmul.f32 0.35355338, %v3381_v24 }
0x182f   : > { %v3395_v30 = vsel %vm997_vm7, %v3391_v26, -inf }
0x1830   : > { %v3392_v29 = vsel %vm993_vm6, %v3390_v25, -inf }
0x1831   : > { %3393 = vmax.xlane.f32.xlu1 %v3392_v29 }
0x1835   : > { %3396 = vmax.xlane.f32.xlu1 %v3395_v30 }
0x18b5   : > { %v3111_v31 = vpop.xlane.xlu1 %3110 }
0x18b6   : > { %v3113_v33 = vsub.f32 %v3105_v20, %v3111_v31  ;;  %v3108_v34 = vpop.xlane.xlu0 %3107 }
0x18b7   : > { %v3112_v36 = vsub.f32 %v3104_v22, %v3108_v34  ;;  %v4129_v34 = vld [vmem:[%s5998_s12 + $0x20] sm:$0xff] }
0x18b8   : > { %v3116_v28 = vmul.f32 1.442695, %v3113_v33 }
0x18b9   : > { %v3114_v35 = vmul.f32 1.442695, %v3112_v36  ;;  %v4130_v36 = vld [vmem:[%s5998_s12 + $0x28] sm:$0xff] }
0x18ba   : > { %5034 = vpow2.f32 %v3116_v28  ;;  %v4778_v28 = vpack.c.bf16 %v4130_v36, %v4129_v34  ;;  %v4154_v36 = vld [vmem:[%s6001_s15 + $0x1] ss:$0 sm:$0xff] }
0x18bb   : > { %5036 = vpow2.f32 %v3114_v35  ;;  %v4131_v35 = vld [vmem:[%s5998_s12 + $0x30] sm:$0xff] }
0x18bc   : > { %4779 = vmatprep.subr.bf16.mxu1 %v4778_v28 }
0x18bd   : > { %4781 = vmatpush3.bf16.msra.mxu1 %v4778_v28 }
0x18be   : > { %v3394_v37 = vpop.xlane.xlu1 %3393 }
0x18bf   : > { %v3398_v38 = vsub.f32 %v3390_v25, %v3394_v37  ;;  %v4132_v37 = vld [vmem:[%s5998_s12 + $0x38] sm:$0xff] }
0x18c1   : > { %v3400_v42 = vmul.f32 1.442695, %v3398_v38  ;;  %v4782_v38 = vpack.c.bf16 %v4132_v37, %v4131_v35 }
0x18c2   : > { %v3397_v39 = vpop.xlane.xlu1 %3396 }
0x18c3   : > { %v3399_v40 = vsub.f32 %v3391_v26, %v3397_v39  ;;  %4783 = vmatprep.subr.bf16.mxu1 %v4782_v38  ;;  %v4137_v39 = vld [vmem:[%s6000_s14 + $0x80] sm:$0xff] }
0x18c4   : > { %v5035_v41 = vpop.eup %5034  ;;  %4785 = vmatpush3.bf16.msra.mxu1 %v4782_v38 }
0x18c5   : > { %v3402_v43 = vmul.f32 1.442695, %v3399_v40  ;;  %v3121_v44 = vsel %vm997_vm7, %v5035_v41, 0.0  ;;  %v5037_v45 = vpop.eup %5036  ;;  %4818 = vmatprep.subr.bf16.mxu1 %v5124_v3  ;;  %v4138_v40 = vld [vmem:[%s6000_s14 + $0x88] sm:$0xff] }
0x18c6   : > { %3122 = vadd.xlane.f32.xlu0 %v3121_v44  ;;  %v3118_v27 = vsel %vm993_vm6, %v5037_v45, 0.0 }
0x18c7   : > { %5038 = vpow2.f32 %v3402_v43  ;;  %v4140_v43 = vld [vmem:[%s6000_s14 + $0x98] sm:$0xff] }
0x18c8   : > { %5040 = vpow2.f32 %v3400_v42  ;;  %v4786_v42 = vpack.c.bf16 %v4138_v40, %v4137_v39 }
0x18ca   : > { %3119 = vadd.xlane.f32.xlu0 %v3118_v27  ;;  %v4142_v27 = vld [vmem:[%s6000_s14 + $0xa8] sm:$0xff] }
0x18d1   : > { %v5039_v46 = vpop.eup %5038 }
0x18d2   : > { %v3407_v47 = vsel %vm997_vm7, %v5039_v46, 0.0  ;;  %v5041_v49 = vpop.eup %5040 }
0x18d3   : > { %3408 = vadd.xlane.f32.xlu1 %v3407_v47  ;;  %v3404_v50 = vsel %vm993_vm6, %v5041_v49, 0.0 }
0x18d7   : > { %3405 = vadd.xlane.f32.xlu1 %v3404_v50 }
0x18e0   : > { %4961 = vrot.lane.b32.xlu0 %v5705_v57, %s6057_s1  ;;  %s5944_s1 = scalar_lea.hbm %s6059_s25, %s4156_s29 }
0x18e8   : > { %4966 = vrot.lane.b32.xlu1 %v5705_v57, %s6058_s23  ;;  %s3946_s23 = scalar_lea.sflag [#allocation3], %s620_s3 }
0x1953   : > { %v3123_v52 = vpop.xlane.xlu0 %3122 }
0x1954   : > { %5042 = vrcp.f32 %v3123_v52 }
0x1957   : > { %v3120_v53 = vpop.xlane.xlu0 %3119 }
0x1958   : > { %5044 = vrcp.f32 %v3120_v53 }
0x195b   : > { %v4962_v54 = vpop.permute.xlu0 %4961 }
0x195c   : > { %v4964_v55 = vunpack.i.h.bf16 %v4962_v54  ;;  %v4963_v61 = vunpack.i.l.bf16 %v4962_v54 }
0x195e   : > { %v4760_v62 = vpack.c.bf16 %v4964_v55, %v4963_v61  ;;  %v5043_v1 = vpop.eup %5042  ;;  %v4127_v61 = vld [vmem:[%s5996_s10 + $0x1] ss:$0 sm:$0xff] }
0x195f   : > { %v3127_v51 = vmul.f32 %v5043_v1, %v5035_v41  ;;  %v4139_v41 = vld [vmem:[%s6000_s14 + $0x90] sm:$0xff] }
0x1960   : > { %v3409_v0 = vpop.xlane.xlu1 %3408  ;;  %4762 = vmatprep.subr.msk.bf16.mxu0 %vm5467_vm10, %v4760_v62  ;;  %v4790_v44 = vpack.c.bf16 %v4140_v43, %v4139_v41  ;;  %v3865_v43 = vld [vmem:[%s6004_s18] sm:$0xff] }
0x1961   : > { %4765 = vmatpush3.bf16.msk.msra.mxu0 %vm5467_vm10, %v4760_v62 }
0x1962   : > { %v5045_v57 = vpop.eup %5044  ;;  %4509 = vmatprep.subr.mxu0 %v4085_v63 }
0x1963   : > { %v3126_v2 = vmul.f32 %v5045_v57, %v5037_v45  ;;  %v4141_v45 = vld [vmem:[%s6000_s14 + $0xa0] sm:$0xff] }
0x1964   : > { %v3406_v48 = vpop.xlane.xlu1 %3405 }
0x1965   : > { %4506 = vmatprep.mubr.msk.f32.mxu0 %vm993_vm6, %v3126_v2  ;;  %5046 = vrcp.f32 %v3406_v48 }
0x1966   : > { %4507 = vmatmul.mubr.msk.f32.vlgmr.msra.gmra.mrb[16].mxu0 %vm993_vm6, %v3127_v51  ;;  %5048 = vrcp.f32 %v3409_v0 }
0x1967   : > { %4510 = vmatpush3.msra.mxu0 %v4085_v63  ;;  %v4128_v63 = vld [vmem:[%s5997_s11 + $0x1] ss:$0 sm:$0xff] }
0x1968   : > { %v4967_v4 = vpop.permute.xlu1 %4966 }
0x1969   : > { %v4969_v5 = vunpack.i.h.bf16 %v4967_v4  ;;  %v4968_v6 = vunpack.i.l.bf16 %v4967_v4  ;;  %v4143_v4 = vld [vmem:[%s6000_s14 + $0xb0] sm:$0xff] }
0x196b   : > { %v4772_v7 = vpack.c.bf16 %v4969_v5, %v4968_v6  ;;  %v4144_v5 = vld [vmem:[%s6000_s14 + $0xb8] sm:$0xff] }
0x196c   : > { %v4798_v6 = vpack.c.bf16 %v4144_v5, %v4143_v4 }
0x196d   : > { %4774 = vmatprep.subr.msk.bf16.mxu0 %vm5467_vm10, %v4772_v7 }
0x196f   : > { %v5047_v8 = vpop.eup %5046 }
0x1970   : > { %v5049_v56 = vpop.eup %5048  ;;  %v3412_v11 = vmul.f32 %v5047_v8, %v5041_v49  ;;  %v4146_v8 = vld [vmem:[%s6000_s14 + $0xc8] sm:$0xff] }
0x1971   : > { %v3413_v13 = vmul.f32 %v5049_v56, %v5039_v46  ;;  %v4794_v46 = vpack.c.bf16 %v4142_v27, %v4141_v45  ;;  %v4148_v56 = vld [vmem:[%s6000_s14 + $0xd8] sm:$0xff]  ;;  %v3867_v45 = vld [vmem:[%s6004_s18 + $0x10] sm:$0xff] }
0x1972   : > { %v3868_v27 = vld [vmem:[%s6004_s18 + $0x18] sm:$0xff] }
0x1a39   : > { %v4508_v9 = vpop.f32.mrb[16].mxu0 }
0x1a3a   : > { %v3207_v10 = vpop.f32.mrb[17].mxu0 }
0x1a3b   : > { %4511 = vmatprep.mubr.msk.f32.mxu0 %vm907_vm4, %v3207_v10  ;;  %v4147_v10 = vld [vmem:[%s6000_s14 + $0xd0] sm:$0xff] }
0x1a3c   : > { %4512 = vmatmul.mubr.msk.f32.vlgmr.msra.gmra.mrb[14].mxu0 %vm907_vm4, %v4508_v9 }
0x1a3d   : > { %4777 = vmatpush3.bf16.msk.msra.mxu0 %vm5467_vm10, %v4772_v7  ;;  %4525 = vmatprep.mubr.msk.f32.mxu0 %vm993_vm6, %v3412_v11  ;;  %v4145_v7 = vld [vmem:[%s6000_s14 + $0xc0] sm:$0xff]  ;;  %v4806_v11 = vpack.c.bf16 %v4148_v56, %v4147_v10 }
0x1a3e   : > { %4528 = vmatprep.subr.mxu0 %v4086_v12  ;;  %v4802_v9 = vpack.c.bf16 %v4146_v8, %v4145_v7 }
0x1a40   : > { %4526 = vmatmul.mubr.msk.f32.vlgmr.msra.gmra.mrb[18].mxu0 %vm993_vm6, %v3413_v13  ;;  %v4150_v13 = vld [vmem:[%s6000_s14 + $0xe8] sm:$0xff] }
0x1a41   : > { %4529 = vmatpush3.msra.mxu0 %v4086_v12  ;;  %v4149_v12 = vld [vmem:[%s6000_s14 + $0xe0] sm:$0xff] }
0x1a42   : > { %4787 = vmatprep.subr.bf16.mxu0 %v4786_v42 }
0x1b13   : > { %v4527_v14 = vpop.f32.mrb[18].mxu0 }
0x1b14   : > { %v3493_v17 = vpop.f32.mrb[19].mxu0 }
0x1b15   : > { %4530 = vmatprep.mubr.msk.f32.mxu0 %vm907_vm4, %v3493_v17  ;;  %v4151_v17 = vld [vmem:[%s6000_s14 + $0xf0] sm:$0xff] }
0x1b16   : > { %4531 = vmatmul.mubr.msk.f32.vlgmr.msra.gmra.mrb[14].mxu0 %vm907_vm4, %v4527_v14  ;;  %v4810_v14 = vpack.c.bf16 %v4150_v13, %v4149_v12 }
0x1b17   : > { %4789 = vmatpush3.bf16.msra.mxu0 %v4786_v42 }
0x1b18   : > { %4791 = vmatprep.subr.bf16.mxu0 %v4790_v44 }
0x1b1b   : > { %4793 = vmatpush3.bf16.msra.mxu0 %v4790_v44  ;;  %v3866_v44 = vld [vmem:[%s6004_s18 + $0x8] sm:$0xff] }
0x1b1c   : > { %4795 = vmatprep.subr.bf16.mxu0 %v4794_v46 }
0x1b1f   : > { %4797 = vmatpush3.bf16.msra.mxu0 %v4794_v46  ;;  %v4822_v46 = vpack.c.bf16 %v3868_v27, %v3867_v45 }
0x1b20   : > { %4799 = vmatprep.subr.bf16.mxu0 %v4798_v6 }
0x1b23   : > { %4801 = vmatpush3.bf16.msra.mxu0 %v4798_v6 }
0x1b24   : > { %4803 = vmatprep.subr.bf16.mxu0 %v4802_v9 }
0x1b27   : > { %4805 = vmatpush3.bf16.msra.mxu0 %v4802_v9 }
0x1b28   : > { %4807 = vmatprep.subr.bf16.mxu0 %v4806_v11 }
0x1b2b   : > { %4809 = vmatpush3.bf16.msra.mxu0 %v4806_v11 }
0x1b2c   : > { %4811 = vmatprep.subr.bf16.mxu0 %v4810_v14 }
0x1b2f   : > { %4813 = vmatpush3.bf16.msra.mxu0 %v4810_v14 }
0x1be9   : > { %v4532_v18 = vpop.f32.mrb[14].mxu0 }
0x1bea   : > { %v3586_v60 = vadd.f32 %v4532_v18, %v5664_v16  ;;  %v3574_v32 = vpop.f32.mrb[15].mxu0  ;;  %v4152_v18 = vld [vmem:[%s6000_s14 + $0xf8] sm:$0xff] }
0x1beb   : > { %v3585_v20 = vadd.f32 %v3574_v32, %v5662_v15 }
0x1bec   : > { %v3596_v21 = vadd.f32 %v4124_v19, %v3586_v60  ;;  %v4134_v60 = vld [vmem:[%s5999_s13 + $0x1] ss:$0 sm:$0xff] }
0x1bed   : > { %v5830_v22 = vadd.f32 %v4124_v19, %v3585_v20  ;;  %v4814_v19 = vpack.c.bf16 %v4152_v18, %v4151_v17 }
0x1bee   : > { %v3604_v58 = vsel %vm764_vm3, %v3596_v21, 0.0 }
0x1bef   : > { %3605 = vadd.xlane.f32.xlu1 %v3604_v58  ;;  %v3601_v23 = vsel %vm760_vm2, %v5830_v22, 0.0  ;;  %4815 = vmatprep.subr.bf16.mxu0 %v4814_v19 }
0x1bf0   : > { %3602 = vadd.xlane.f32.xlu0 %v3601_v23  ;;  %4817 = vmatpush3.bf16.msra.mxu0 %v4814_v19 }
0x1c7c   : > { %v3606_v59 = vpop.xlane.xlu1 %3605 }
0x1c7d   : > { %v3608_v24 = vmul.f32 0.03125, %v3606_v59  ;;  %v3603_v25 = vpop.xlane.xlu0 %3602 }
0x1c7e   : > { %v3607_v26 = vmul.f32 0.03125, %v3603_v25 }
0x1c7f   : > { %v3610_v29 = vsub.f32 %v3596_v21, %v3608_v24 }
0x1c80   : > { %v3609_v16 = vsub.f32 %v5830_v22, %v3607_v26 }
0x1c81   : > { %v3612_v31 = vmul.f32 %v3610_v29, %v3610_v29 }
0x1c82   : > { %v3611_v30 = vmul.f32 %v3609_v16, %v3609_v16 }
0x1c83   : > { %v3616_v33 = vsel %vm764_vm3, %v3612_v31, 0.0 }
0x1c84   : > { %v3613_v15 = vsel %vm760_vm2, %v3611_v30, 0.0 }
0x1c85   : > { %3614 = vadd.xlane.f32.xlu0 %v3613_v15 }
0x1c89   : > { %3617 = vadd.xlane.f32.xlu0 %v3616_v33 }
0x1d12   : > { %v3615_v47 = vpop.xlane.xlu0 %3614 }
0x1d13   : > { %v3619_v49 = vmul.f32 0.03125, %v3615_v47  ;;  %v5138_v47 = vmov 0.0  }
0x1d15   : > { %v3621_v50 = vadd.f32 1e-05, %v3619_v49 }
0x1d16   : > { %v3618_v52 = vpop.xlane.xlu0 %3617 }
0x1d17   : > { %5050 = vrsqrt.f32 %v3621_v50  ;;  %v3620_v53 = vmul.f32 0.03125, %v3618_v52 }
0x1d19   : > { %v3622_v54 = vadd.f32 1e-05, %v3620_v53  ;;  %v3848_v53 = vld [vmem:[%s6002_s16] sm:$0x1] }
0x1d1b   : > { %5052 = vrsqrt.f32 %v3622_v54 }
0x1d21   : > { %v5051_v55 = vpop.eup %5050 }
0x1d22   : > { %v3625_v62 = vmul.f32 %v5051_v55, %v3609_v16  ;;  %v3849_v55 = vld [vmem:[%s6003_s17] sm:$0x1] }
0x1d24   : > { %v3633_v0 = vmul.f32 %v4127_v61, %v3625_v62 }
0x1d25   : > { %v5053_v1 = vpop.eup %5052 }
0x1d26   : > { %v3626_v57 = vmul.f32 %v5053_v1, %v3610_v29  ;;  %v3641_v2 = vadd.f32 %v4128_v63, %v3633_v0 }
0x1d28   : > { %v3634_v51 = vmul.f32 %v4127_v61, %v3626_v57  ;;  %4541 = vmatprep.mubr.msk.f32.mxu1 %vm760_vm2, %v3641_v2 }
0x1d2a   : > { %v3642_v48 = vadd.f32 %v4128_v63, %v3634_v51  ;;  %v3869_v63 = vld [vmem:[%s6005_s19] sm:$0x1] }
0x1d2c   : > { %4542 = vmatmul.mubr.msk.f32.vlgmr.msra.gmra.mrb[28].mxu1 %vm760_vm2, %v3642_v48 }
0x1d2d   : > { %4587 = vmatprep.mubr.msk.f32.mxu1 %vm5137_vm11, %v5138_v47 }
0x1dff   : > { %v4543_v32 = vpop.f32.mrb[28].mxu1 }
0x1e00   : > { %v3734_v20 = vadd.f32 %v4543_v32, %v4134_v60  ;;  %v3728_v21 = vpop.f32.mrb[29].mxu1 }
0x1e01   : > { %v3729_v58 = vadd.f32 %v4134_v60, %v3728_v21 }
0x1e02   : > { %v3740_v23 = vmul.f32 0.70710677, %v3734_v20  ;;  %v3738_v30 = vmul.f32 0.5, %v3734_v20 }
0x1e03   : > { %v3739_v59 = vmul.f32 0.70710677, %v3729_v58  ;;  %v3737_v29 = vmul.f32 0.5, %v3729_v58 }
0x1e04   : > { %5054 = verf.f32 %v3740_v23 }
0x1e05   : > { %5056 = verf.f32 %v3739_v59 }
0x1e0e   : > { %v5055_v24 = vpop.eup %5054 }
0x1e0f   : > { %v5057_v25 = vpop.eup %5056  ;;  %v3744_v26 = vadd.f32 1.0, %v5055_v24 }
0x1e10   : > { %v3743_v16 = vadd.f32 1.0, %v5057_v25 }
0x1e11   : > { %v3746_v31 = vmul.f32 %v3744_v26, %v3738_v30 }
0x1e12   : > { %v3745_v15 = vmul.f32 %v3743_v16, %v3737_v29 }
0x1e14   : > { %4576 = vmatprep.mubr.f32.mxu0 %v3745_v15 }
0x1e15   : > { %4577 = vmatmul.mubr.f32.vlgmr.msra.gmra.mrb[20].mxu0 %v3746_v31 }
0x1ee8   : > { %v4578_v33 = vpop.f32.mrb[20].mxu0 }
0x1ee9   : > { %v3830_v34 = vpop.f32.mrb[21].mxu0 }
0x1eea   : > { %v3838_v28 = vadd.f32 %v3830_v34, %v5830_v22  ;;  %v4819_v22 = vpack.c.bf16 %v3866_v44, %v3865_v43 }
0x1eec   : > { %v3847_v35 = vadd.f32 %v4154_v36, %v3838_v28  ;;  %4820 = vmatpush3.bf16.msra.mxu1 %v4819_v22 }
0x1eed   : > { %4821 = vmatprep.subr.bf16.mxu1 %v5124_v3 }
0x1eee   : > { %v3850_v37 = vsel %vm764_vm3, %v3847_v35, 0.0 }
0x1eef   : > { %3851 = vadd.xlane.f32.xlu0 %v3850_v37 }
0x1ef0   : > { %4823 = vmatpush3.bf16.msra.mxu1 %v4822_v46 }
0x1f7c   : > { %v3852_v38 = vpop.xlane.xlu0 %3851 }
0x1f7d   : > { %v3853_v39 = vmul.f32 0.03125, %v3852_v38 }
0x1f7f   : > { %v3854_v40 = vsub.f32 %v3847_v35, %v3853_v39 }
0x1f81   : > { %v3855_v41 = vmul.f32 %v3854_v40, %v3854_v40 }
0x1f83   : > { %v3856_v42 = vsel %vm764_vm3, %v3855_v41, 0.0 }
0x1f84   : > { %3857 = vadd.xlane.f32.xlu0 %v3856_v42 }
0x2011   : > { %v3858_v49 = vpop.xlane.xlu0 %3857 }
0x2012   : > { %v3859_v50 = vmul.f32 0.03125, %v3858_v49 }
0x2014   : > { %v3860_v52 = vadd.f32 1e-05, %v3859_v50 }
0x2016   : > { %5058 = vrsqrt.f32 %v3860_v52 }
0x2020   : > { %v5059_v3 = vpop.eup %5058 }
0x2021   : > { %v3862_v54 = vmul.f32 %v5059_v3, %v3854_v40 }
0x2023   : > { %v3863_v61 = vmul.f32 %v3862_v54, %v3848_v53 }
0x2025   : > { %v3864_v62 = vadd.f32 %v3863_v61, %v3849_v55 }
0x2027   : > { %4588 = vmatmul.mubr.msk.f32.vlgmr.msra.gmra.mrb[30].mxu1 %vm760_vm2, %v3864_v62 }
0x20fa   : > { %v3939_v0 = vpop.f32.mrb[30].mxu1 }
0x20fb   : > { %v3940_v1 = vadd.f32 %v3939_v0, %v3869_v63  ;;  %v4589_v57 = vpop.f32.mrb[31].mxu1 }
0x20fd   : > { %3944 = vst.msk [vmem:[%s621_s26] sm:$0x1] %vm3943_vm12, %v3940_v1 }
0x20fe   : > { %5073 = shalt.err (!%p5070_p3)
}
0x20ff   : > { %s5074_s3 = scalar_lea.hbm %s5944_s1, 16  ;;  %s5078_s28 = scalar_lea.hbm %s6059_s25, 32 }
0x2100   : > { %p5075_p4 = scmp.ne.s32.totalorder %s5944_s1, %s5074_s3  ;;  %p5079_p9 = scmp.lt.u32.totalorder %s5944_s1, %s6059_s25 }
0x2101   : > { %p5080_p10 = scmp.lt.u32.totalorder %s5078_s28, %s5074_s3  ;;  %p5082_p12 = scmp.lt.u32.totalorder %s5074_s3, %s5944_s1 }
0x2102   : > { %p5076_p7 = pnand %p5075_p4, %p5283_p5 }
0x2103   : > { %p5081_p11 = por %p5080_p10, %p5079_p9 }
0x2104   : > { %p5077_p8 = pneg %p5076_p7 }
0x2105   : > { %p5083_p13 = por %p5082_p12, %p5081_p11 }
0x2107   : > { %p5084_p0 = pnand %p5083_p13, %p5077_p8 }
0x2109   : > { %5087 = shalt.err (!%p5084_p0)
}
0x210a   : > { %4836 = dma.vmem_to_hbm [thread:$0]  (%p5283_p5), %s5946_s27, 16, %s5944_s1, %s3946_s23  }
0x210b PF: > { %s6060_s5 = sld [smem:[#allocation7_spill]]  ;;  %s6061_s0 = sld [smem:[#allocation5_spill]] }
0x2111   : > { %p4842_p1 = scmp.ge.s32.totalorder %s6060_s5, 2  ;;  %s3970_s29 = sand.u32 1, %s6061_s0  }
0x2112   : > { %s3971_s26 = scalar_lea.sflag [#allocation3], %s3970_s29 }
0x2113   : > { %p4839_p2 = pnand %p4842_p1, %p5287_p6 }
0x2115   : > { %5105 = dma.done.wait (!%p4839_p2), %s3971_s26, 16  }
0x2116   : > { %5107 = vsyncadd (!%p4839_p2), %s3971_s26, 4294967280  ;;  %s6063_s24 = sld [smem:[#allocation8_spill]]  ;;  %s6064_s3 = sld [smem:[#allocation6_spill]] }
0x2117   : > { %s6065_s23 = sld [smem:[#allocation9_spill]]  ;;  %s6066_s1 = smov %s5114_s22 }
0x211c   : > { %p30_p3 = scmp.ge.s32.totalorder %s6063_s24, 4   ;;  %s6067_s22 = smov %s6064_s3 }
0x211e   :  { %32 = sbr.rel (!%p30_p3) target bundleno = 11 (0xb), region = 147 }
0x2125   :  { %3975 = vsyncpa [#allocation3], 1 }
0x2126   :  { %3977 = vsyncpa [#allocation3 + $0x1], 1 }

</bundles_post_ra>
